<compile_context>
chip_gen: v6e
topology: v6e:2x2x1
jax: 0.10.0
libtpu: 0.0.40
codegen_flags: <defaults>
</compile_context>

<pallas_src>
import math

import numpy as np
import jax
import jax.numpy as jnp
from jax import lax
from jax.experimental import pallas as pl
from jax.experimental.pallas import tpu as pltpu

# ----------------------------- config ---------------------------------------
SEQ = 8
BATCH = 2
INP_DIM = 40
HIDDEN = 32
NUM_LAYERS = 2
NUM_HEADS = 4
HEAD_DIM = HIDDEN // NUM_HEADS
INTERMEDIATE = 64
DR = 1                     # downsample_rate
LN_EPS = 1e-12

# --------------------- packed "vector blob" row layout -----------------------
VEC_W = 128                               # lane width of the packed vector blob
R_POS = 0                                 # rows [0, B*S): tiled positional encoding
R_SPEC_B = BATCH * SEQ                    # 16
R_IN_G = R_SPEC_B + 1                     # 17
R_IN_B = R_SPEC_B + 2                     # 18
R_LAYER0 = R_SPEC_B + 3                   # 19
ROWS_PER_LAYER = 8                        # bqkv, bo, ln1_g, ln1_b, b1, b2, ln2_g, ln2_b
VEC_ROWS = R_LAYER0 + NUM_LAYERS * ROWS_PER_LAYER  # 35
VEC_ROWS_PADDED = ((VEC_ROWS + 7) // 8) * 8        # 40


# ----------------------- sinusoid position table -----------------------------
def position_encoding(seq_len, hidden_size):
    pos = np.arange(seq_len, dtype=np.float64)[:, None]
    hid = np.arange(hidden_size)[None, :]
    angle = pos / np.power(10000.0, 2 * (hid // 2) / hidden_size)
    table = np.zeros((seq_len, hidden_size), dtype=np.float64)
    table[:, 0::2] = np.sin(angle[:, 0::2])
    table[:, 1::2] = np.cos(angle[:, 1::2])
    return table.astype(np.float32)


# ------------------------------ math helpers ----------------------------------
def _layernorm(x, gamma, beta):
    u = jnp.mean(x, axis=-1, keepdims=True)
    d = x - u
    s = jnp.mean(d * d, axis=-1, keepdims=True)
    return d * lax.rsqrt(s + LN_EPS) * gamma + beta


def _gelu(x):
    # TODO(synk): reference Mockingjay uses exact erf-based GELU; tanh approximation
    # is used here since erf has no clean Mosaic lowering (within 2e-2 tolerance).
    return 0.5 * x * (1.0 + jnp.tanh(0.7978845608028654 * (x + 0.044715 * x * x * x)))


# ------------------------------ fused Pallas kernel ---------------------------
def fused_transformer_kernel(x_ref, vec_ref, spec_w_ref, wqkv_ref, wo_ref,
                             w1_ref, w2_ref, out_ref):
    B, S, H, NH, HD = BATCH, SEQ, HIDDEN, NUM_HEADS, HEAD_DIM
    BS = B * S

    x = x_ref[...]                                               # (B*S, Din), batch-major

    # --- attention mask bias (same recipe as process_input_data) ------------
    x3 = x.reshape(B, S, INP_DIM)
    fs = jnp.sum(x3, axis=-1, keepdims=True)                     # (B, S, 1)
    nz = (fs != 0.0).astype(jnp.int32)
    spec_len = jnp.sum(nz, axis=1, keepdims=True)                # (B, 1, 1)
    key_pos = lax.broadcasted_iota(jnp.int32, (B, 1, S), 2)      # (B, 1, S)
    bias = jnp.where(key_pos < spec_len, 0.0, -10000.0)          # (B, 1, S) f32
    bias_bh = jnp.concatenate([bias] * NH, axis=0)               # (NH*B, 1, S) head-major

    # --- input representation: linear + pos-enc + LayerNorm ------------------
    pos = vec_ref[R_POS:R_POS + BS, 0:H]                         # (B*S, H) tiled pos-enc
    spec_b = vec_ref[R_SPEC_B:R_SPEC_B + 1, 0:H]
    in_g = vec_ref[R_IN_G:R_IN_G + 1, 0:H]
    in_b = vec_ref[R_IN_B:R_IN_B + 1, 0:H]

    h = jnp.dot(x, spec_w_ref[...], preferred_element_type=jnp.float32) + spec_b
    h = _layernorm(h + pos, in_g, in_b)                          # (B*S, H)

    for l in range(NUM_LAYERS):                                  # static unroll (L=2)
        base = R_LAYER0 + l * ROWS_PER_LAYER
        bqkv = vec_ref[base + 0:base + 1, 0:3 * H]               # (1, 3H)
        bo = vec_ref[base + 1:base + 2, 0:H]
        ln1_g = vec_ref[base + 2:base + 3, 0:H]
        ln1_b = vec_ref[base + 3:base + 4, 0:H]
        bff1 = vec_ref[base + 4:base + 5, 0:INTERMEDIATE]
        bff2 = vec_ref[base + 5:base + 6, 0:H]
        ln2_g = vec_ref[base + 6:base + 7, 0:H]
        ln2_b = vec_ref[base + 7:base + 8, 0:H]

        # --- fused QKV projection: one (B*S, H) @ (H, 3H) matmul ------------
        qkv = jnp.dot(h, wqkv_ref[l], preferred_element_type=jnp.float32) + bqkv  # (16, 96)

        # --- gather heads -> (NH*B, S, HD), head-major / batch-minor --------
        q_parts, k_parts, v_parts = [], [], []
        for hh in range(NH):
            q_parts.append(qkv[:, hh * HD:(hh + 1) * HD].reshape(B, S, HD))
            k_parts.append(qkv[:, H + hh * HD:H + (hh + 1) * HD].reshape(B, S, HD))
            v_parts.append(qkv[:, 2 * H + hh * HD:2 * H + (hh + 1) * HD].reshape(B, S, HD))
        q = jnp.concatenate(q_parts, axis=0)                     # (NH*B, S, HD)
        k = jnp.concatenate(k_parts, axis=0)
        v = jnp.concatenate(v_parts, axis=0)

        # --- attention: single batched contraction over NH*B ----------------
        sc = lax.dot_general(q, k, (((2,), (2,)), ((0,), (0,))),
                             preferred_element_type=jnp.float32)  # (NH*B, S, S)
        sc = sc + bias_bh
        m = jnp.max(sc, axis=-1, keepdims=True)
        p = jnp.exp(sc - m)
        denom = jnp.sum(p, axis=-1, keepdims=True)
        p = p * pl.reciprocal(denom, approx=True)
        ctx = lax.dot_general(p, v, (((2,), (1,)), ((0,), (0,))),
                              preferred_element_type=jnp.float32)  # (NH*B, S, HD)

        # --- re-gather heads into lanes -> (B*S, H); one output projection --
        ctx_flat = jnp.concatenate(
            [ctx[hh * B:(hh + 1) * B].reshape(BS, HD) for hh in range(NH)], axis=-1)
        attn_out = jnp.dot(ctx_flat, wo_ref[l],
                           preferred_element_type=jnp.float32) + bo
        h = _layernorm(attn_out + h, ln1_g, ln1_b)

        # --- feed-forward -----------------------------------------------------
        inter = jnp.dot(h, w1_ref[l], preferred_element_type=jnp.float32) + bff1
        inter = _gelu(inter)
        ffn = jnp.dot(inter, w2_ref[l], preferred_element_type=jnp.float32) + bff2
        h = _layernorm(ffn + h, ln2_g, ln2_b)

    out_ref[...] = h


# ------------------------------ pallas_call wrapper ----------------------------
def _full_spec(a):
    nd = a.ndim
    return pl.BlockSpec(a.shape, lambda i, _nd=nd: (0,) * _nd)


def transformer_forward(x, fused):
    # x: (seq, batch, inp_dim); permute_input=True handled by the wrapper transpose.
    S, B, Din = x.shape
    x_flat = jnp.transpose(x, (1, 0, 2)).reshape(B * S, Din)     # batch-major rows
    args = (x_flat, fused["vecs"], fused["spec_w"],
            fused["wqkv"], fused["wo"], fused["w1"], fused["w2"])
    out_flat = pl.pallas_call(
        fused_transformer_kernel,
        out_shape=jax.ShapeDtypeStruct((B * S, HIDDEN), jnp.float32),
        grid=(1,),
        in_specs=[_full_spec(a) for a in args],
        out_specs=pl.BlockSpec((B * S, HIDDEN), lambda i: (0, 0)),
        compiler_params=pltpu.CompilerParams(
            dimension_semantics=("arbitrary",)),
    )(*args)
    return jnp.transpose(out_flat.reshape(B, S, HIDDEN), (1, 0, 2))


# ---------------------- host-side one-time parameter prep ----------------------
def prepare_fused_params(params):
    scale = 1.0 / math.sqrt(HEAD_DIM)

    pos = position_encoding(SEQ, HIDDEN)                         # (S, H)
    pos_flat = np.tile(pos, (BATCH, 1))                          # (B*S, H)

    vecs = np.zeros((VEC_ROWS_PADDED, VEC_W), np.float32)
    vecs[R_POS:R_POS + BATCH * SEQ, 0:HIDDEN] = pos_flat
    vecs[R_SPEC_B, 0:HIDDEN] = np.asarray(params["spec_b"]).reshape(-1)
    vecs[R_IN_G, 0:HIDDEN] = np.asarray(params["in_ln_g"]).reshape(-1)
    vecs[R_IN_B, 0:HIDDEN] = np.asarray(params["in_ln_b"]).reshape(-1)

    wqkv, wo, w1, w2 = [], [], [], []
    for l, lp in enumerate(params["layers"]):
        base = R_LAYER0 + l * ROWS_PER_LAYER
        wqkv.append(np.concatenate([np.asarray(lp["wq"]) * scale,
                                    np.asarray(lp["wk"]),
                                    np.asarray(lp["wv"])], axis=1))      # (H, 3H)
        wo.append(np.asarray(lp["wo"]))                                  # (H, H)
        w1.append(np.asarray(lp["w1"]))                                  # (H, I)
        w2.append(np.asarray(lp["w2"]))                                  # (I, H)
        vecs[base + 0, 0:3 * HIDDEN] = np.concatenate(
            [np.asarray(lp["bq"]).reshape(-1) * scale,
             np.asarray(lp["bk"]).reshape(-1),
             np.asarray(lp["bv"]).reshape(-1)])
        vecs[base + 1, 0:HIDDEN] = np.asarray(lp["bo"]).reshape(-1)
        vecs[base + 2, 0:HIDDEN] = np.asarray(lp["attn_ln_g"]).reshape(-1)
        vecs[base + 3, 0:HIDDEN] = np.asarray(lp["attn_ln_b"]).reshape(-1)
        vecs[base + 4, 0:INTERMEDIATE] = np.asarray(lp["b1"]).reshape(-1)
        vecs[base + 5, 0:HIDDEN] = np.asarray(lp["b2"]).reshape(-1)
        vecs[base + 6, 0:HIDDEN] = np.asarray(lp["ffn_ln_g"]).reshape(-1)
        vecs[base + 7, 0:HIDDEN] = np.asarray(lp["ffn_ln_b"]).reshape(-1)

    return {
        "vecs": jnp.asarray(vecs),
        "spec_w": jnp.asarray(params["spec_w"]),
        "wqkv": jnp.asarray(np.stack(wqkv)),     # (L, H, 3H)
        "wo": jnp.asarray(np.stack(wo)),         # (L, H, H)
        "w1": jnp.asarray(np.stack(w1)),         # (L, H, I)
        "w2": jnp.asarray(np.stack(w2)),         # (L, I, H)
    }


# ------------------------------ reference (pure JAX) --------------------------
def reference_forward(x, params):
    hp = jax.lax.Precision.HIGHEST
    x = jnp.transpose(x, (1, 0, 2))
    B, S, _ = x.shape
    spec_len = jnp.sum(jnp.sum(x, axis=-1) != 0, axis=-1)
    attn_mask = (jnp.arange(S)[None, :] < spec_len[:, None]).astype(jnp.float32)
    bias = (1.0 - attn_mask) * -10000.0                                # (B, S)
    pos = jnp.asarray(position_encoding(S, HIDDEN))

    h = jnp.dot(x, params["spec_w"], precision=hp) + params["spec_b"]
    h = _layernorm(h + pos[None], params["in_ln_g"], params["in_ln_b"])
    for lp in params["layers"]:
        q = jnp.dot(h, lp["wq"], precision=hp) + lp["bq"]
        k = jnp.dot(h, lp["wk"], precision=hp) + lp["bk"]
        v = jnp.dot(h, lp["wv"], precision=hp) + lp["bv"]
        split = lambda t: t.reshape(B, S, NUM_HEADS, HEAD_DIM).transpose(0, 2, 1, 3)
        qh, kh, vh = split(q), split(k), split(v)
        sc = jnp.einsum("bhqd,bhkd->bhqk", qh, kh, precision=hp) / math.sqrt(HEAD_DIM)
        sc = sc + bias[:, None, None, :]
        p = jax.nn.softmax(sc, axis=-1)
        ctx = jnp.einsum("bhqk,bhkd->bhqd", p, vh, precision=hp)
        ctx = ctx.transpose(0, 2, 1, 3).reshape(B, S, HIDDEN)
        attn_out = jnp.dot(ctx, lp["wo"], precision=hp) + lp["bo"]
        h = _layernorm(attn_out + h, lp["attn_ln_g"], lp["attn_ln_b"])
        inter = _gelu(jnp.dot(h, lp["w1"], precision=hp) + lp["b1"])
        out = jnp.dot(inter, lp["w2"], precision=hp) + lp["b2"]
        h = _layernorm(out + h, lp["ffn_ln_g"], lp["ffn_ln_b"])
    return jnp.transpose(h, (1, 0, 2))


# ------------------------------ deterministic params --------------------------
def init_params(key):
    # weights stored in "x @ W" orientation: (in_features, out_features)
    def nrm(k, shape):
        return 0.02 * jax.random.normal(k, shape, jnp.float32)

    keys = jax.random.split(key, 2 + NUM_LAYERS)
    params = {
        "spec_w": nrm(keys[0], (INP_DIM * DR, HIDDEN)),
        "spec_b": nrm(keys[1], (1, HIDDEN)),
        "in_ln_g": jnp.ones((1, HIDDEN), jnp.float32),
        "in_ln_b": jnp.zeros((1, HIDDEN), jnp.float32),
        "layers": [],
    }
    for li in range(NUM_LAYERS):
        lk = jax.random.split(keys[2 + li], 12)
        params["layers"].append({
            "wq": nrm(lk[0], (HIDDEN, HIDDEN)), "bq": nrm(lk[1], (1, HIDDEN)),
            "wk": nrm(lk[2], (HIDDEN, HIDDEN)), "bk": nrm(lk[3], (1, HIDDEN)),
            "wv": nrm(lk[4], (HIDDEN, HIDDEN)), "bv": nrm(lk[5], (1, HIDDEN)),
            "wo": nrm(lk[6], (HIDDEN, HIDDEN)), "bo": nrm(lk[7], (1, HIDDEN)),
            "attn_ln_g": jnp.ones((1, HIDDEN), jnp.float32),
            "attn_ln_b": jnp.zeros((1, HIDDEN), jnp.float32),
            "w1": nrm(lk[8], (HIDDEN, INTERMEDIATE)), "b1": nrm(lk[9], (1, INTERMEDIATE)),
            "w2": nrm(lk[10], (INTERMEDIATE, HIDDEN)), "b2": nrm(lk[11], (1, HIDDEN)),
            "ffn_ln_g": jnp.ones((1, HIDDEN), jnp.float32),
            "ffn_ln_b": jnp.zeros((1, HIDDEN), jnp.float32),
        })
    return params


# ------------------------------ main ------------------------------------------
if __name__ == "__main__":
    key = jax.random.PRNGKey(0)
    kx, kp = jax.random.split(key)
    x = jax.random.normal(kx, (SEQ, BATCH, INP_DIM), jnp.float32)
    params = init_params(kp)
    fused = prepare_fused_params(params)     # one-time host-side weight repacking

    out = jax.jit(transformer_forward)(x, fused)
    out = jax.block_until_ready(out)

    assert out.shape == (SEQ, BATCH, HIDDEN), out.shape
    ref = jax.block_until_ready(reference_forward(x, params))
    np.testing.assert_allclose(np.asarray(out), np.asarray(ref), rtol=2e-2, atol=2e-2)
    print("KERNEL_OK")
</pallas_src>

<mosaic_0001>
module attributes {stable_mosaic.version = 11 : i64} {
  func.func @fused_transformer_kernel(%arg0: i32, %arg1: memref<16x40xf32, #tpu.memory_space<vmem>>, %arg2: memref<40x128xf32, #tpu.memory_space<vmem>>, %arg3: memref<40x32xf32, #tpu.memory_space<vmem>>, %arg4: memref<2x32x96xf32, #tpu.memory_space<vmem>>, %arg5: memref<2x32x32xf32, #tpu.memory_space<vmem>>, %arg6: memref<2x32x64xf32, #tpu.memory_space<vmem>>, %arg7: memref<2x64x32xf32, #tpu.memory_space<vmem>>, %arg8: memref<16x32xf32, #tpu.memory_space<vmem>>) attributes {dimension_semantics = [#tpu.dimension_semantics<arbitrary>], iteration_bounds = array<i64: 1>, scalar_prefetch = 0 : i64, scratch_operands = 0 : i64, tpu.core_type = #tpu.core_type<tc>, window_params = [{pipeline_mode = #tpu.pipeline_mode<synchronous>, transform_indices = @transform_0, window_bounds = array<i64: 16, 40>}, {pipeline_mode = #tpu.pipeline_mode<synchronous>, transform_indices = @transform_1, window_bounds = array<i64: 40, 128>}, {pipeline_mode = #tpu.pipeline_mode<synchronous>, transform_indices = @transform_2, window_bounds = array<i64: 40, 32>}, {pipeline_mode = #tpu.pipeline_mode<synchronous>, transform_indices = @transform_3, window_bounds = array<i64: 2, 32, 96>}, {pipeline_mode = #tpu.pipeline_mode<synchronous>, transform_indices = @transform_4, window_bounds = array<i64: 2, 32, 32>}, {pipeline_mode = #tpu.pipeline_mode<synchronous>, transform_indices = @transform_5, window_bounds = array<i64: 2, 32, 64>}, {pipeline_mode = #tpu.pipeline_mode<synchronous>, transform_indices = @transform_6, window_bounds = array<i64: 2, 64, 32>}, {pipeline_mode = #tpu.pipeline_mode<synchronous>, transform_indices = @transform_7, window_bounds = array<i64: 16, 32>}]} {
    %c0 = arith.constant 0 : index
    %c0_0 = arith.constant 0 : index
    %0 = vector.load %arg1[%c0, %c0_0] : memref<16x40xf32, #tpu.memory_space<vmem>>, vector<16x40xf32>
    %1 = vector.shape_cast %0 : vector<16x40xf32> to vector<2x8x40xf32>
    %cst = arith.constant dense<0.000000e+00> : vector<2x8xf32>
    %2 = vector.multi_reduction <add>, %1, %cst [2] : vector<2x8x40xf32> to vector<2x8xf32>
    %3 = vector.shape_cast %2 : vector<2x8xf32> to vector<2x8x1xf32>
    %cst_1 = arith.constant 0.000000e+00 : f32
    %4 = vector.broadcast %cst_1 : f32 to vector<2x8x1xf32>
    %5 = arith.cmpf one, %3, %4 : vector<2x8x1xf32>
    %6 = arith.extui %5 : vector<2x8x1xi1> to vector<2x8x1xi32>
    %cst_2 = arith.constant dense<0> : vector<2x1xi32>
    %7 = vector.multi_reduction <add>, %6, %cst_2 [1] : vector<2x8x1xi32> to vector<2x1xi32>
    %8 = vector.shape_cast %7 : vector<2x1xi32> to vector<2x1x1xi32>
    %9 = tpu.iota {dimensions = array<i32: 2>} : vector<2x1x8xi32>
    %10 = vector.broadcast %8 : vector<2x1x1xi32> to vector<2x1x8xi32>
    %11 = arith.cmpi slt, %9, %10 : vector<2x1x8xi32>
    %cst_3 = arith.constant 0.000000e+00 : f32
    %cst_4 = arith.constant -1.000000e+04 : f32
    %12 = vector.broadcast %cst_3 : f32 to vector<2x1x8xf32>
    %13 = vector.broadcast %cst_4 : f32 to vector<2x1x8xf32>
    %14 = arith.select %11, %12, %13 : vector<2x1x8xi1>, vector<2x1x8xf32>
    %15 = tpu.concatenate %14, %14, %14, %14 in 0 : vector<2x1x8xf32>, vector<2x1x8xf32>, vector<2x1x8xf32>, vector<2x1x8xf32> -> vector<8x1x8xf32>
    %c0_5 = arith.constant 0 : index
    %c0_6 = arith.constant 0 : index
    %16 = vector.load %arg2[%c0_5, %c0_6] : memref<40x128xf32, #tpu.memory_space<vmem>>, vector<16x32xf32>
    %c16 = arith.constant 16 : index
    %c0_7 = arith.constant 0 : index
    %17 = vector.load %arg2[%c16, %c0_7] : memref<40x128xf32, #tpu.memory_space<vmem>>, vector<1x32xf32>
    %c17 = arith.constant 17 : index
    %c0_8 = arith.constant 0 : index
    %18 = vector.load %arg2[%c17, %c0_8] : memref<40x128xf32, #tpu.memory_space<vmem>>, vector<1x32xf32>
    %c18 = arith.constant 18 : index
    %c0_9 = arith.constant 0 : index
    %19 = vector.load %arg2[%c18, %c0_9] : memref<40x128xf32, #tpu.memory_space<vmem>>, vector<1x32xf32>
    %c0_10 = arith.constant 0 : index
    %c0_11 = arith.constant 0 : index
    %20 = vector.load %arg3[%c0_10, %c0_11] : memref<40x32xf32, #tpu.memory_space<vmem>>, vector<40x32xf32>
    %cst_12 = arith.constant dense<0.000000e+00> : vector<16x32xf32>
    %21 = tpu.matmul %0, %20, %cst_12 {dimension_numbers = #tpu.dot_dimension_numbers<[1], [0], [0], [1], [0, 0, 1, 1], [], []>} : vector<16x40xf32>, vector<40x32xf32>, vector<16x32xf32> -> vector<16x32xf32>
    %22 = vector.broadcast %17 : vector<1x32xf32> to vector<16x32xf32>
    %23 = arith.addf %21, %22 : vector<16x32xf32>
    %24 = arith.addf %23, %16 : vector<16x32xf32>
    %cst_13 = arith.constant dense<0.000000e+00> : vector<16xf32>
    %25 = vector.multi_reduction <add>, %24, %cst_13 [1] : vector<16x32xf32> to vector<16xf32>
    %26 = vector.shape_cast %25 : vector<16xf32> to vector<16x1xf32>
    %cst_14 = arith.constant 3.200000e+01 : f32
    %27 = vector.broadcast %cst_14 : f32 to vector<16x1xf32>
    %28 = arith.divf %26, %27 : vector<16x1xf32>
    %29 = vector.broadcast %28 : vector<16x1xf32> to vector<16x32xf32>
    %30 = arith.subf %24, %29 : vector<16x32xf32>
    %31 = arith.mulf %30, %30 : vector<16x32xf32>
    %cst_15 = arith.constant dense<0.000000e+00> : vector<16xf32>
    %32 = vector.multi_reduction <add>, %31, %cst_15 [1] : vector<16x32xf32> to vector<16xf32>
    %33 = vector.shape_cast %32 : vector<16xf32> to vector<16x1xf32>
    %cst_16 = arith.constant 3.200000e+01 : f32
    %34 = vector.broadcast %cst_16 : f32 to vector<16x1xf32>
    %35 = arith.divf %33, %34 : vector<16x1xf32>
    %cst_17 = arith.constant 9.99999996E-13 : f32
    %36 = vector.broadcast %cst_17 : f32 to vector<16x1xf32>
    %37 = arith.addf %35, %36 : vector<16x1xf32>
    %38 = math.rsqrt %37 : vector<16x1xf32>
    %39 = vector.broadcast %38 : vector<16x1xf32> to vector<16x32xf32>
    %40 = arith.mulf %30, %39 : vector<16x32xf32>
    %41 = vector.broadcast %18 : vector<1x32xf32> to vector<16x32xf32>
    %42 = arith.mulf %40, %41 : vector<16x32xf32>
    %43 = vector.broadcast %19 : vector<1x32xf32> to vector<16x32xf32>
    %44 = arith.addf %42, %43 : vector<16x32xf32>
    %c19 = arith.constant 19 : index
    %c0_18 = arith.constant 0 : index
    %45 = vector.load %arg2[%c19, %c0_18] : memref<40x128xf32, #tpu.memory_space<vmem>>, vector<1x96xf32>
    %c20 = arith.constant 20 : index
    %c0_19 = arith.constant 0 : index
    %46 = vector.load %arg2[%c20, %c0_19] : memref<40x128xf32, #tpu.memory_space<vmem>>, vector<1x32xf32>
    %c21 = arith.constant 21 : index
    %c0_20 = arith.constant 0 : index
    %47 = vector.load %arg2[%c21, %c0_20] : memref<40x128xf32, #tpu.memory_space<vmem>>, vector<1x32xf32>
    %c22 = arith.constant 22 : index
    %c0_21 = arith.constant 0 : index
    %48 = vector.load %arg2[%c22, %c0_21] : memref<40x128xf32, #tpu.memory_space<vmem>>, vector<1x32xf32>
    %c23 = arith.constant 23 : index
    %c0_22 = arith.constant 0 : index
    %49 = vector.load %arg2[%c23, %c0_22] : memref<40x128xf32, #tpu.memory_space<vmem>>, vector<1x64xf32>
    %c24 = arith.constant 24 : index
    %c0_23 = arith.constant 0 : index
    %50 = vector.load %arg2[%c24, %c0_23] : memref<40x128xf32, #tpu.memory_space<vmem>>, vector<1x32xf32>
    %c25 = arith.constant 25 : index
    %c0_24 = arith.constant 0 : index
    %51 = vector.load %arg2[%c25, %c0_24] : memref<40x128xf32, #tpu.memory_space<vmem>>, vector<1x32xf32>
    %c26 = arith.constant 26 : index
    %c0_25 = arith.constant 0 : index
    %52 = vector.load %arg2[%c26, %c0_25] : memref<40x128xf32, #tpu.memory_space<vmem>>, vector<1x32xf32>
    %c0_26 = arith.constant 0 : index
    %c0_27 = arith.constant 0 : index
    %c0_28 = arith.constant 0 : index
    %53 = vector.load %arg4[%c0_26, %c0_27, %c0_28] : memref<2x32x96xf32, #tpu.memory_space<vmem>>, vector<1x32x96xf32>
    %54 = vector.shape_cast %53 : vector<1x32x96xf32> to vector<32x96xf32>
    %cst_29 = arith.constant dense<0.000000e+00> : vector<16x96xf32>
    %55 = tpu.matmul %44, %54, %cst_29 {dimension_numbers = #tpu.dot_dimension_numbers<[1], [0], [0], [1], [0, 0, 1, 1], [], []>} : vector<16x32xf32>, vector<32x96xf32>, vector<16x96xf32> -> vector<16x96xf32>
    %56 = vector.broadcast %45 : vector<1x96xf32> to vector<16x96xf32>
    %57 = arith.addf %55, %56 : vector<16x96xf32>
    %58 = vector.extract_strided_slice %57 {offsets = [0, 0], sizes = [16, 8], strides = [1, 1]} : vector<16x96xf32> to vector<16x8xf32>
    %59 = vector.shape_cast %58 : vector<16x8xf32> to vector<2x8x8xf32>
    %60 = vector.extract_strided_slice %57 {offsets = [0, 32], sizes = [16, 8], strides = [1, 1]} : vector<16x96xf32> to vector<16x8xf32>
    %61 = vector.shape_cast %60 : vector<16x8xf32> to vector<2x8x8xf32>
    %62 = vector.extract_strided_slice %57 {offsets = [0, 64], sizes = [16, 8], strides = [1, 1]} : vector<16x96xf32> to vector<16x8xf32>
    %63 = vector.shape_cast %62 : vector<16x8xf32> to vector<2x8x8xf32>
    %64 = vector.extract_strided_slice %57 {offsets = [0, 8], sizes = [16, 8], strides = [1, 1]} : vector<16x96xf32> to vector<16x8xf32>
    %65 = vector.shape_cast %64 : vector<16x8xf32> to vector<2x8x8xf32>
    %66 = vector.extract_strided_slice %57 {offsets = [0, 40], sizes = [16, 8], strides = [1, 1]} : vector<16x96xf32> to vector<16x8xf32>
    %67 = vector.shape_cast %66 : vector<16x8xf32> to vector<2x8x8xf32>
    %68 = vector.extract_strided_slice %57 {offsets = [0, 72], sizes = [16, 8], strides = [1, 1]} : vector<16x96xf32> to vector<16x8xf32>
    %69 = vector.shape_cast %68 : vector<16x8xf32> to vector<2x8x8xf32>
    %70 = vector.extract_strided_slice %57 {offsets = [0, 16], sizes = [16, 8], strides = [1, 1]} : vector<16x96xf32> to vector<16x8xf32>
    %71 = vector.shape_cast %70 : vector<16x8xf32> to vector<2x8x8xf32>
    %72 = vector.extract_strided_slice %57 {offsets = [0, 48], sizes = [16, 8], strides = [1, 1]} : vector<16x96xf32> to vector<16x8xf32>
    %73 = vector.shape_cast %72 : vector<16x8xf32> to vector<2x8x8xf32>
    %74 = vector.extract_strided_slice %57 {offsets = [0, 80], sizes = [16, 8], strides = [1, 1]} : vector<16x96xf32> to vector<16x8xf32>
    %75 = vector.shape_cast %74 : vector<16x8xf32> to vector<2x8x8xf32>
    %76 = vector.extract_strided_slice %57 {offsets = [0, 24], sizes = [16, 8], strides = [1, 1]} : vector<16x96xf32> to vector<16x8xf32>
    %77 = vector.shape_cast %76 : vector<16x8xf32> to vector<2x8x8xf32>
    %78 = vector.extract_strided_slice %57 {offsets = [0, 56], sizes = [16, 8], strides = [1, 1]} : vector<16x96xf32> to vector<16x8xf32>
    %79 = vector.shape_cast %78 : vector<16x8xf32> to vector<2x8x8xf32>
    %80 = vector.extract_strided_slice %57 {offsets = [0, 88], sizes = [16, 8], strides = [1, 1]} : vector<16x96xf32> to vector<16x8xf32>
    %81 = vector.shape_cast %80 : vector<16x8xf32> to vector<2x8x8xf32>
    %82 = tpu.concatenate %59, %65, %71, %77 in 0 : vector<2x8x8xf32>, vector<2x8x8xf32>, vector<2x8x8xf32>, vector<2x8x8xf32> -> vector<8x8x8xf32>
    %83 = tpu.concatenate %61, %67, %73, %79 in 0 : vector<2x8x8xf32>, vector<2x8x8xf32>, vector<2x8x8xf32>, vector<2x8x8xf32> -> vector<8x8x8xf32>
    %84 = tpu.concatenate %63, %69, %75, %81 in 0 : vector<2x8x8xf32>, vector<2x8x8xf32>, vector<2x8x8xf32>, vector<2x8x8xf32> -> vector<8x8x8xf32>
    %cst_30 = arith.constant dense<0.000000e+00> : vector<8x8x8xf32>
    %85 = tpu.matmul %82, %83, %cst_30 {dimension_numbers = #tpu.dot_dimension_numbers<[2], [2], [1], [1], [0, 0, 0, 1, 1, 1], [0], [0]>} : vector<8x8x8xf32>, vector<8x8x8xf32>, vector<8x8x8xf32> -> vector<8x8x8xf32>
    %86 = vector.broadcast %15 : vector<8x1x8xf32> to vector<8x8x8xf32>
    %87 = arith.addf %85, %86 : vector<8x8x8xf32>
    %cst_31 = arith.constant dense<0xFF800000> : vector<8x8xf32>
    %88 = vector.multi_reduction <maximumf>, %87, %cst_31 [2] : vector<8x8x8xf32> to vector<8x8xf32>
    %89 = vector.shape_cast %88 : vector<8x8xf32> to vector<8x8x1xf32>
    %90 = vector.broadcast %89 : vector<8x8x1xf32> to vector<8x8x8xf32>
    %91 = arith.subf %87, %90 : vector<8x8x8xf32>
    %92 = math.exp %91 : vector<8x8x8xf32>
    %cst_32 = arith.constant dense<0.000000e+00> : vector<8x8xf32>
    %93 = vector.multi_reduction <add>, %92, %cst_32 [2] : vector<8x8x8xf32> to vector<8x8xf32>
    %94 = vector.shape_cast %93 : vector<8x8xf32> to vector<8x8x1xf32>
    %95 = tpu.reciprocal %94 {approx = true} : vector<8x8x1xf32> -> vector<8x8x1xf32>
    %96 = vector.broadcast %95 : vector<8x8x1xf32> to vector<8x8x8xf32>
    %97 = arith.mulf %92, %96 : vector<8x8x8xf32>
    %cst_33 = arith.constant dense<0.000000e+00> : vector<8x8x8xf32>
    %98 = tpu.matmul %97, %84, %cst_33 {dimension_numbers = #tpu.dot_dimension_numbers<[2], [1], [1], [2], [0, 0, 0, 1, 1, 2], [0], [0]>} : vector<8x8x8xf32>, vector<8x8x8xf32>, vector<8x8x8xf32> -> vector<8x8x8xf32>
    %99 = vector.extract_strided_slice %98 {offsets = [0, 0, 0], sizes = [2, 8, 8], strides = [1, 1, 1]} : vector<8x8x8xf32> to vector<2x8x8xf32>
    %100 = vector.shape_cast %99 : vector<2x8x8xf32> to vector<16x8xf32>
    %101 = vector.extract_strided_slice %98 {offsets = [2, 0, 0], sizes = [2, 8, 8], strides = [1, 1, 1]} : vector<8x8x8xf32> to vector<2x8x8xf32>
    %102 = vector.shape_cast %101 : vector<2x8x8xf32> to vector<16x8xf32>
    %103 = vector.extract_strided_slice %98 {offsets = [4, 0, 0], sizes = [2, 8, 8], strides = [1, 1, 1]} : vector<8x8x8xf32> to vector<2x8x8xf32>
    %104 = vector.shape_cast %103 : vector<2x8x8xf32> to vector<16x8xf32>
    %105 = vector.extract_strided_slice %98 {offsets = [6, 0, 0], sizes = [2, 8, 8], strides = [1, 1, 1]} : vector<8x8x8xf32> to vector<2x8x8xf32>
    %106 = vector.shape_cast %105 : vector<2x8x8xf32> to vector<16x8xf32>
    %107 = tpu.concatenate %100, %102, %104, %106 in 1 : vector<16x8xf32>, vector<16x8xf32>, vector<16x8xf32>, vector<16x8xf32> -> vector<16x32xf32>
    %c0_34 = arith.constant 0 : index
    %c0_35 = arith.constant 0 : index
    %c0_36 = arith.constant 0 : index
    %108 = vector.load %arg5[%c0_34, %c0_35, %c0_36] : memref<2x32x32xf32, #tpu.memory_space<vmem>>, vector<1x32x32xf32>
    %109 = vector.shape_cast %108 : vector<1x32x32xf32> to vector<32x32xf32>
    %cst_37 = arith.constant dense<0.000000e+00> : vector<16x32xf32>
    %110 = tpu.matmul %107, %109, %cst_37 {dimension_numbers = #tpu.dot_dimension_numbers<[1], [0], [0], [1], [0, 0, 1, 1], [], []>} : vector<16x32xf32>, vector<32x32xf32>, vector<16x32xf32> -> vector<16x32xf32>
    %111 = vector.broadcast %46 : vector<1x32xf32> to vector<16x32xf32>
    %112 = arith.addf %110, %111 : vector<16x32xf32>
    %113 = arith.addf %112, %44 : vector<16x32xf32>
    %cst_38 = arith.constant dense<0.000000e+00> : vector<16xf32>
    %114 = vector.multi_reduction <add>, %113, %cst_38 [1] : vector<16x32xf32> to vector<16xf32>
    %115 = vector.shape_cast %114 : vector<16xf32> to vector<16x1xf32>
    %cst_39 = arith.constant 3.200000e+01 : f32
    %116 = vector.broadcast %cst_39 : f32 to vector<16x1xf32>
    %117 = arith.divf %115, %116 : vector<16x1xf32>
    %118 = vector.broadcast %117 : vector<16x1xf32> to vector<16x32xf32>
    %119 = arith.subf %113, %118 : vector<16x32xf32>
    %120 = arith.mulf %119, %119 : vector<16x32xf32>
    %cst_40 = arith.constant dense<0.000000e+00> : vector<16xf32>
    %121 = vector.multi_reduction <add>, %120, %cst_40 [1] : vector<16x32xf32> to vector<16xf32>
    %122 = vector.shape_cast %121 : vector<16xf32> to vector<16x1xf32>
    %cst_41 = arith.constant 3.200000e+01 : f32
    %123 = vector.broadcast %cst_41 : f32 to vector<16x1xf32>
    %124 = arith.divf %122, %123 : vector<16x1xf32>
    %cst_42 = arith.constant 9.99999996E-13 : f32
    %125 = vector.broadcast %cst_42 : f32 to vector<16x1xf32>
    %126 = arith.addf %124, %125 : vector<16x1xf32>
    %127 = math.rsqrt %126 : vector<16x1xf32>
    %128 = vector.broadcast %127 : vector<16x1xf32> to vector<16x32xf32>
    %129 = arith.mulf %119, %128 : vector<16x32xf32>
    %130 = vector.broadcast %47 : vector<1x32xf32> to vector<16x32xf32>
    %131 = arith.mulf %129, %130 : vector<16x32xf32>
    %132 = vector.broadcast %48 : vector<1x32xf32> to vector<16x32xf32>
    %133 = arith.addf %131, %132 : vector<16x32xf32>
    %c0_43 = arith.constant 0 : index
    %c0_44 = arith.constant 0 : index
    %c0_45 = arith.constant 0 : index
    %134 = vector.load %arg6[%c0_43, %c0_44, %c0_45] : memref<2x32x64xf32, #tpu.memory_space<vmem>>, vector<1x32x64xf32>
    %135 = vector.shape_cast %134 : vector<1x32x64xf32> to vector<32x64xf32>
    %cst_46 = arith.constant dense<0.000000e+00> : vector<16x64xf32>
    %136 = tpu.matmul %133, %135, %cst_46 {dimension_numbers = #tpu.dot_dimension_numbers<[1], [0], [0], [1], [0, 0, 1, 1], [], []>} : vector<16x32xf32>, vector<32x64xf32>, vector<16x64xf32> -> vector<16x64xf32>
    %137 = vector.broadcast %49 : vector<1x64xf32> to vector<16x64xf32>
    %138 = arith.addf %136, %137 : vector<16x64xf32>
    %cst_47 = arith.constant 5.000000e-01 : f32
    %139 = vector.broadcast %cst_47 : f32 to vector<16x64xf32>
    %140 = arith.mulf %139, %138 : vector<16x64xf32>
    %cst_48 = arith.constant 4.471500e-02 : f32
    %141 = vector.broadcast %cst_48 : f32 to vector<16x64xf32>
    %142 = arith.mulf %141, %138 : vector<16x64xf32>
    %143 = arith.mulf %142, %138 : vector<16x64xf32>
    %144 = arith.mulf %143, %138 : vector<16x64xf32>
    %145 = arith.addf %138, %144 : vector<16x64xf32>
    %cst_49 = arith.constant 0.797884583 : f32
    %146 = vector.broadcast %cst_49 : f32 to vector<16x64xf32>
    %147 = arith.mulf %146, %145 : vector<16x64xf32>
    %148 = math.tanh %147 : vector<16x64xf32>
    %cst_50 = arith.constant 1.000000e+00 : f32
    %149 = vector.broadcast %cst_50 : f32 to vector<16x64xf32>
    %150 = arith.addf %149, %148 : vector<16x64xf32>
    %151 = arith.mulf %140, %150 : vector<16x64xf32>
    %c0_51 = arith.constant 0 : index
    %c0_52 = arith.constant 0 : index
    %c0_53 = arith.constant 0 : index
    %152 = vector.load %arg7[%c0_51, %c0_52, %c0_53] : memref<2x64x32xf32, #tpu.memory_space<vmem>>, vector<1x64x32xf32>
    %153 = vector.shape_cast %152 : vector<1x64x32xf32> to vector<64x32xf32>
    %cst_54 = arith.constant dense<0.000000e+00> : vector<16x32xf32>
    %154 = tpu.matmul %151, %153, %cst_54 {dimension_numbers = #tpu.dot_dimension_numbers<[1], [0], [0], [1], [0, 0, 1, 1], [], []>} : vector<16x64xf32>, vector<64x32xf32>, vector<16x32xf32> -> vector<16x32xf32>
    %155 = vector.broadcast %50 : vector<1x32xf32> to vector<16x32xf32>
    %156 = arith.addf %154, %155 : vector<16x32xf32>
    %157 = arith.addf %156, %133 : vector<16x32xf32>
    %cst_55 = arith.constant dense<0.000000e+00> : vector<16xf32>
    %158 = vector.multi_reduction <add>, %157, %cst_55 [1] : vector<16x32xf32> to vector<16xf32>
    %159 = vector.shape_cast %158 : vector<16xf32> to vector<16x1xf32>
    %cst_56 = arith.constant 3.200000e+01 : f32
    %160 = vector.broadcast %cst_56 : f32 to vector<16x1xf32>
    %161 = arith.divf %159, %160 : vector<16x1xf32>
    %162 = vector.broadcast %161 : vector<16x1xf32> to vector<16x32xf32>
    %163 = arith.subf %157, %162 : vector<16x32xf32>
    %164 = arith.mulf %163, %163 : vector<16x32xf32>
    %cst_57 = arith.constant dense<0.000000e+00> : vector<16xf32>
    %165 = vector.multi_reduction <add>, %164, %cst_57 [1] : vector<16x32xf32> to vector<16xf32>
    %166 = vector.shape_cast %165 : vector<16xf32> to vector<16x1xf32>
    %cst_58 = arith.constant 3.200000e+01 : f32
    %167 = vector.broadcast %cst_58 : f32 to vector<16x1xf32>
    %168 = arith.divf %166, %167 : vector<16x1xf32>
    %cst_59 = arith.constant 9.99999996E-13 : f32
    %169 = vector.broadcast %cst_59 : f32 to vector<16x1xf32>
    %170 = arith.addf %168, %169 : vector<16x1xf32>
    %171 = math.rsqrt %170 : vector<16x1xf32>
    %172 = vector.broadcast %171 : vector<16x1xf32> to vector<16x32xf32>
    %173 = arith.mulf %163, %172 : vector<16x32xf32>
    %174 = vector.broadcast %51 : vector<1x32xf32> to vector<16x32xf32>
    %175 = arith.mulf %173, %174 : vector<16x32xf32>
    %176 = vector.broadcast %52 : vector<1x32xf32> to vector<16x32xf32>
    %177 = arith.addf %175, %176 : vector<16x32xf32>
    %c27 = arith.constant 27 : index
    %c0_60 = arith.constant 0 : index
    %178 = vector.load %arg2[%c27, %c0_60] : memref<40x128xf32, #tpu.memory_space<vmem>>, vector<1x96xf32>
    %c28 = arith.constant 28 : index
    %c0_61 = arith.constant 0 : index
    %179 = vector.load %arg2[%c28, %c0_61] : memref<40x128xf32, #tpu.memory_space<vmem>>, vector<1x32xf32>
    %c29 = arith.constant 29 : index
    %c0_62 = arith.constant 0 : index
    %180 = vector.load %arg2[%c29, %c0_62] : memref<40x128xf32, #tpu.memory_space<vmem>>, vector<1x32xf32>
    %c30 = arith.constant 30 : index
    %c0_63 = arith.constant 0 : index
    %181 = vector.load %arg2[%c30, %c0_63] : memref<40x128xf32, #tpu.memory_space<vmem>>, vector<1x32xf32>
    %c31 = arith.constant 31 : index
    %c0_64 = arith.constant 0 : index
    %182 = vector.load %arg2[%c31, %c0_64] : memref<40x128xf32, #tpu.memory_space<vmem>>, vector<1x64xf32>
    %c32 = arith.constant 32 : index
    %c0_65 = arith.constant 0 : index
    %183 = vector.load %arg2[%c32, %c0_65] : memref<40x128xf32, #tpu.memory_space<vmem>>, vector<1x32xf32>
    %c33 = arith.constant 33 : index
    %c0_66 = arith.constant 0 : index
    %184 = vector.load %arg2[%c33, %c0_66] : memref<40x128xf32, #tpu.memory_space<vmem>>, vector<1x32xf32>
    %c34 = arith.constant 34 : index
    %c0_67 = arith.constant 0 : index
    %185 = vector.load %arg2[%c34, %c0_67] : memref<40x128xf32, #tpu.memory_space<vmem>>, vector<1x32xf32>
    %c1 = arith.constant 1 : index
    %c0_68 = arith.constant 0 : index
    %c0_69 = arith.constant 0 : index
    %186 = vector.load %arg4[%c1, %c0_68, %c0_69] : memref<2x32x96xf32, #tpu.memory_space<vmem>>, vector<1x32x96xf32>
    %187 = vector.shape_cast %186 : vector<1x32x96xf32> to vector<32x96xf32>
    %cst_70 = arith.constant dense<0.000000e+00> : vector<16x96xf32>
    %188 = tpu.matmul %177, %187, %cst_70 {dimension_numbers = #tpu.dot_dimension_numbers<[1], [0], [0], [1], [0, 0, 1, 1], [], []>} : vector<16x32xf32>, vector<32x96xf32>, vector<16x96xf32> -> vector<16x96xf32>
    %189 = vector.broadcast %178 : vector<1x96xf32> to vector<16x96xf32>
    %190 = arith.addf %188, %189 : vector<16x96xf32>
    %191 = vector.extract_strided_slice %190 {offsets = [0, 0], sizes = [16, 8], strides = [1, 1]} : vector<16x96xf32> to vector<16x8xf32>
    %192 = vector.shape_cast %191 : vector<16x8xf32> to vector<2x8x8xf32>
    %193 = vector.extract_strided_slice %190 {offsets = [0, 32], sizes = [16, 8], strides = [1, 1]} : vector<16x96xf32> to vector<16x8xf32>
    %194 = vector.shape_cast %193 : vector<16x8xf32> to vector<2x8x8xf32>
    %195 = vector.extract_strided_slice %190 {offsets = [0, 64], sizes = [16, 8], strides = [1, 1]} : vector<16x96xf32> to vector<16x8xf32>
    %196 = vector.shape_cast %195 : vector<16x8xf32> to vector<2x8x8xf32>
    %197 = vector.extract_strided_slice %190 {offsets = [0, 8], sizes = [16, 8], strides = [1, 1]} : vector<16x96xf32> to vector<16x8xf32>
    %198 = vector.shape_cast %197 : vector<16x8xf32> to vector<2x8x8xf32>
    %199 = vector.extract_strided_slice %190 {offsets = [0, 40], sizes = [16, 8], strides = [1, 1]} : vector<16x96xf32> to vector<16x8xf32>
    %200 = vector.shape_cast %199 : vector<16x8xf32> to vector<2x8x8xf32>
    %201 = vector.extract_strided_slice %190 {offsets = [0, 72], sizes = [16, 8], strides = [1, 1]} : vector<16x96xf32> to vector<16x8xf32>
    %202 = vector.shape_cast %201 : vector<16x8xf32> to vector<2x8x8xf32>
    %203 = vector.extract_strided_slice %190 {offsets = [0, 16], sizes = [16, 8], strides = [1, 1]} : vector<16x96xf32> to vector<16x8xf32>
    %204 = vector.shape_cast %203 : vector<16x8xf32> to vector<2x8x8xf32>
    %205 = vector.extract_strided_slice %190 {offsets = [0, 48], sizes = [16, 8], strides = [1, 1]} : vector<16x96xf32> to vector<16x8xf32>
    %206 = vector.shape_cast %205 : vector<16x8xf32> to vector<2x8x8xf32>
    %207 = vector.extract_strided_slice %190 {offsets = [0, 80], sizes = [16, 8], strides = [1, 1]} : vector<16x96xf32> to vector<16x8xf32>
    %208 = vector.shape_cast %207 : vector<16x8xf32> to vector<2x8x8xf32>
    %209 = vector.extract_strided_slice %190 {offsets = [0, 24], sizes = [16, 8], strides = [1, 1]} : vector<16x96xf32> to vector<16x8xf32>
    %210 = vector.shape_cast %209 : vector<16x8xf32> to vector<2x8x8xf32>
    %211 = vector.extract_strided_slice %190 {offsets = [0, 56], sizes = [16, 8], strides = [1, 1]} : vector<16x96xf32> to vector<16x8xf32>
    %212 = vector.shape_cast %211 : vector<16x8xf32> to vector<2x8x8xf32>
    %213 = vector.extract_strided_slice %190 {offsets = [0, 88], sizes = [16, 8], strides = [1, 1]} : vector<16x96xf32> to vector<16x8xf32>
    %214 = vector.shape_cast %213 : vector<16x8xf32> to vector<2x8x8xf32>
    %215 = tpu.concatenate %192, %198, %204, %210 in 0 : vector<2x8x8xf32>, vector<2x8x8xf32>, vector<2x8x8xf32>, vector<2x8x8xf32> -> vector<8x8x8xf32>
    %216 = tpu.concatenate %194, %200, %206, %212 in 0 : vector<2x8x8xf32>, vector<2x8x8xf32>, vector<2x8x8xf32>, vector<2x8x8xf32> -> vector<8x8x8xf32>
    %217 = tpu.concatenate %196, %202, %208, %214 in 0 : vector<2x8x8xf32>, vector<2x8x8xf32>, vector<2x8x8xf32>, vector<2x8x8xf32> -> vector<8x8x8xf32>
    %cst_71 = arith.constant dense<0.000000e+00> : vector<8x8x8xf32>
    %218 = tpu.matmul %215, %216, %cst_71 {dimension_numbers = #tpu.dot_dimension_numbers<[2], [2], [1], [1], [0, 0, 0, 1, 1, 1], [0], [0]>} : vector<8x8x8xf32>, vector<8x8x8xf32>, vector<8x8x8xf32> -> vector<8x8x8xf32>
    %219 = vector.broadcast %15 : vector<8x1x8xf32> to vector<8x8x8xf32>
    %220 = arith.addf %218, %219 : vector<8x8x8xf32>
    %cst_72 = arith.constant dense<0xFF800000> : vector<8x8xf32>
    %221 = vector.multi_reduction <maximumf>, %220, %cst_72 [2] : vector<8x8x8xf32> to vector<8x8xf32>
    %222 = vector.shape_cast %221 : vector<8x8xf32> to vector<8x8x1xf32>
    %223 = vector.broadcast %222 : vector<8x8x1xf32> to vector<8x8x8xf32>
    %224 = arith.subf %220, %223 : vector<8x8x8xf32>
    %225 = math.exp %224 : vector<8x8x8xf32>
    %cst_73 = arith.constant dense<0.000000e+00> : vector<8x8xf32>
    %226 = vector.multi_reduction <add>, %225, %cst_73 [2] : vector<8x8x8xf32> to vector<8x8xf32>
    %227 = vector.shape_cast %226 : vector<8x8xf32> to vector<8x8x1xf32>
    %228 = tpu.reciprocal %227 {approx = true} : vector<8x8x1xf32> -> vector<8x8x1xf32>
    %229 = vector.broadcast %228 : vector<8x8x1xf32> to vector<8x8x8xf32>
    %230 = arith.mulf %225, %229 : vector<8x8x8xf32>
    %cst_74 = arith.constant dense<0.000000e+00> : vector<8x8x8xf32>
    %231 = tpu.matmul %230, %217, %cst_74 {dimension_numbers = #tpu.dot_dimension_numbers<[2], [1], [1], [2], [0, 0, 0, 1, 1, 2], [0], [0]>} : vector<8x8x8xf32>, vector<8x8x8xf32>, vector<8x8x8xf32> -> vector<8x8x8xf32>
    %232 = vector.extract_strided_slice %231 {offsets = [0, 0, 0], sizes = [2, 8, 8], strides = [1, 1, 1]} : vector<8x8x8xf32> to vector<2x8x8xf32>
    %233 = vector.shape_cast %232 : vector<2x8x8xf32> to vector<16x8xf32>
    %234 = vector.extract_strided_slice %231 {offsets = [2, 0, 0], sizes = [2, 8, 8], strides = [1, 1, 1]} : vector<8x8x8xf32> to vector<2x8x8xf32>
    %235 = vector.shape_cast %234 : vector<2x8x8xf32> to vector<16x8xf32>
    %236 = vector.extract_strided_slice %231 {offsets = [4, 0, 0], sizes = [2, 8, 8], strides = [1, 1, 1]} : vector<8x8x8xf32> to vector<2x8x8xf32>
    %237 = vector.shape_cast %236 : vector<2x8x8xf32> to vector<16x8xf32>
    %238 = vector.extract_strided_slice %231 {offsets = [6, 0, 0], sizes = [2, 8, 8], strides = [1, 1, 1]} : vector<8x8x8xf32> to vector<2x8x8xf32>
    %239 = vector.shape_cast %238 : vector<2x8x8xf32> to vector<16x8xf32>
    %240 = tpu.concatenate %233, %235, %237, %239 in 1 : vector<16x8xf32>, vector<16x8xf32>, vector<16x8xf32>, vector<16x8xf32> -> vector<16x32xf32>
    %c1_75 = arith.constant 1 : index
    %c0_76 = arith.constant 0 : index
    %c0_77 = arith.constant 0 : index
    %241 = vector.load %arg5[%c1_75, %c0_76, %c0_77] : memref<2x32x32xf32, #tpu.memory_space<vmem>>, vector<1x32x32xf32>
    %242 = vector.shape_cast %241 : vector<1x32x32xf32> to vector<32x32xf32>
    %cst_78 = arith.constant dense<0.000000e+00> : vector<16x32xf32>
    %243 = tpu.matmul %240, %242, %cst_78 {dimension_numbers = #tpu.dot_dimension_numbers<[1], [0], [0], [1], [0, 0, 1, 1], [], []>} : vector<16x32xf32>, vector<32x32xf32>, vector<16x32xf32> -> vector<16x32xf32>
    %244 = vector.broadcast %179 : vector<1x32xf32> to vector<16x32xf32>
    %245 = arith.addf %243, %244 : vector<16x32xf32>
    %246 = arith.addf %245, %177 : vector<16x32xf32>
    %cst_79 = arith.constant dense<0.000000e+00> : vector<16xf32>
    %247 = vector.multi_reduction <add>, %246, %cst_79 [1] : vector<16x32xf32> to vector<16xf32>
    %248 = vector.shape_cast %247 : vector<16xf32> to vector<16x1xf32>
    %cst_80 = arith.constant 3.200000e+01 : f32
    %249 = vector.broadcast %cst_80 : f32 to vector<16x1xf32>
    %250 = arith.divf %248, %249 : vector<16x1xf32>
    %251 = vector.broadcast %250 : vector<16x1xf32> to vector<16x32xf32>
    %252 = arith.subf %246, %251 : vector<16x32xf32>
    %253 = arith.mulf %252, %252 : vector<16x32xf32>
    %cst_81 = arith.constant dense<0.000000e+00> : vector<16xf32>
    %254 = vector.multi_reduction <add>, %253, %cst_81 [1] : vector<16x32xf32> to vector<16xf32>
    %255 = vector.shape_cast %254 : vector<16xf32> to vector<16x1xf32>
    %cst_82 = arith.constant 3.200000e+01 : f32
    %256 = vector.broadcast %cst_82 : f32 to vector<16x1xf32>
    %257 = arith.divf %255, %256 : vector<16x1xf32>
    %cst_83 = arith.constant 9.99999996E-13 : f32
    %258 = vector.broadcast %cst_83 : f32 to vector<16x1xf32>
    %259 = arith.addf %257, %258 : vector<16x1xf32>
    %260 = math.rsqrt %259 : vector<16x1xf32>
    %261 = vector.broadcast %260 : vector<16x1xf32> to vector<16x32xf32>
    %262 = arith.mulf %252, %261 : vector<16x32xf32>
    %263 = vector.broadcast %180 : vector<1x32xf32> to vector<16x32xf32>
    %264 = arith.mulf %262, %263 : vector<16x32xf32>
    %265 = vector.broadcast %181 : vector<1x32xf32> to vector<16x32xf32>
    %266 = arith.addf %264, %265 : vector<16x32xf32>
    %c1_84 = arith.constant 1 : index
    %c0_85 = arith.constant 0 : index
    %c0_86 = arith.constant 0 : index
    %267 = vector.load %arg6[%c1_84, %c0_85, %c0_86] : memref<2x32x64xf32, #tpu.memory_space<vmem>>, vector<1x32x64xf32>
    %268 = vector.shape_cast %267 : vector<1x32x64xf32> to vector<32x64xf32>
    %cst_87 = arith.constant dense<0.000000e+00> : vector<16x64xf32>
    %269 = tpu.matmul %266, %268, %cst_87 {dimension_numbers = #tpu.dot_dimension_numbers<[1], [0], [0], [1], [0, 0, 1, 1], [], []>} : vector<16x32xf32>, vector<32x64xf32>, vector<16x64xf32> -> vector<16x64xf32>
    %270 = vector.broadcast %182 : vector<1x64xf32> to vector<16x64xf32>
    %271 = arith.addf %269, %270 : vector<16x64xf32>
    %cst_88 = arith.constant 5.000000e-01 : f32
    %272 = vector.broadcast %cst_88 : f32 to vector<16x64xf32>
    %273 = arith.mulf %272, %271 : vector<16x64xf32>
    %cst_89 = arith.constant 4.471500e-02 : f32
    %274 = vector.broadcast %cst_89 : f32 to vector<16x64xf32>
    %275 = arith.mulf %274, %271 : vector<16x64xf32>
    %276 = arith.mulf %275, %271 : vector<16x64xf32>
    %277 = arith.mulf %276, %271 : vector<16x64xf32>
    %278 = arith.addf %271, %277 : vector<16x64xf32>
    %cst_90 = arith.constant 0.797884583 : f32
    %279 = vector.broadcast %cst_90 : f32 to vector<16x64xf32>
    %280 = arith.mulf %279, %278 : vector<16x64xf32>
    %281 = math.tanh %280 : vector<16x64xf32>
    %cst_91 = arith.constant 1.000000e+00 : f32
    %282 = vector.broadcast %cst_91 : f32 to vector<16x64xf32>
    %283 = arith.addf %282, %281 : vector<16x64xf32>
    %284 = arith.mulf %273, %283 : vector<16x64xf32>
    %c1_92 = arith.constant 1 : index
    %c0_93 = arith.constant 0 : index
    %c0_94 = arith.constant 0 : index
    %285 = vector.load %arg7[%c1_92, %c0_93, %c0_94] : memref<2x64x32xf32, #tpu.memory_space<vmem>>, vector<1x64x32xf32>
    %286 = vector.shape_cast %285 : vector<1x64x32xf32> to vector<64x32xf32>
    %cst_95 = arith.constant dense<0.000000e+00> : vector<16x32xf32>
    %287 = tpu.matmul %284, %286, %cst_95 {dimension_numbers = #tpu.dot_dimension_numbers<[1], [0], [0], [1], [0, 0, 1, 1], [], []>} : vector<16x64xf32>, vector<64x32xf32>, vector<16x32xf32> -> vector<16x32xf32>
    %288 = vector.broadcast %183 : vector<1x32xf32> to vector<16x32xf32>
    %289 = arith.addf %287, %288 : vector<16x32xf32>
    %290 = arith.addf %289, %266 : vector<16x32xf32>
    %cst_96 = arith.constant dense<0.000000e+00> : vector<16xf32>
    %291 = vector.multi_reduction <add>, %290, %cst_96 [1] : vector<16x32xf32> to vector<16xf32>
    %292 = vector.shape_cast %291 : vector<16xf32> to vector<16x1xf32>
    %cst_97 = arith.constant 3.200000e+01 : f32
    %293 = vector.broadcast %cst_97 : f32 to vector<16x1xf32>
    %294 = arith.divf %292, %293 : vector<16x1xf32>
    %295 = vector.broadcast %294 : vector<16x1xf32> to vector<16x32xf32>
    %296 = arith.subf %290, %295 : vector<16x32xf32>
    %297 = arith.mulf %296, %296 : vector<16x32xf32>
    %cst_98 = arith.constant dense<0.000000e+00> : vector<16xf32>
    %298 = vector.multi_reduction <add>, %297, %cst_98 [1] : vector<16x32xf32> to vector<16xf32>
    %299 = vector.shape_cast %298 : vector<16xf32> to vector<16x1xf32>
    %cst_99 = arith.constant 3.200000e+01 : f32
    %300 = vector.broadcast %cst_99 : f32 to vector<16x1xf32>
    %301 = arith.divf %299, %300 : vector<16x1xf32>
    %cst_100 = arith.constant 9.99999996E-13 : f32
    %302 = vector.broadcast %cst_100 : f32 to vector<16x1xf32>
    %303 = arith.addf %301, %302 : vector<16x1xf32>
    %304 = math.rsqrt %303 : vector<16x1xf32>
    %305 = vector.broadcast %304 : vector<16x1xf32> to vector<16x32xf32>
    %306 = arith.mulf %296, %305 : vector<16x32xf32>
    %307 = vector.broadcast %184 : vector<1x32xf32> to vector<16x32xf32>
    %308 = arith.mulf %306, %307 : vector<16x32xf32>
    %309 = vector.broadcast %185 : vector<1x32xf32> to vector<16x32xf32>
    %310 = arith.addf %308, %309 : vector<16x32xf32>
    %c0_101 = arith.constant 0 : index
    %c0_102 = arith.constant 0 : index
    %311 = vector.load %arg8[%c0_101, %c0_102] : memref<16x32xf32, #tpu.memory_space<vmem>>, vector<16x32xf32>
    tpu.vector_store %arg8[%c0_101, %c0_102], %310 {strides = array<i32>} : memref<16x32xf32, #tpu.memory_space<vmem>>, vector<16x32xf32>,
    return
  }
  func.func @transform_0(%arg0: i32) -> (i32, i32) {
    %c0_i32 = arith.constant 0 : i32
    %c0_i32_0 = arith.constant 0 : i32
    %c0_i32_1 = arith.constant 0 : i32
    return %c0_i32, %c0_i32_0 : i32, i32
  }
  func.func @transform_1(%arg0: i32) -> (i32, i32) {
    %c0_i32 = arith.constant 0 : i32
    %c0_i32_0 = arith.constant 0 : i32
    %c0_i32_1 = arith.constant 0 : i32
    return %c0_i32, %c0_i32_0 : i32, i32
  }
  func.func @transform_2(%arg0: i32) -> (i32, i32) {
    %c0_i32 = arith.constant 0 : i32
    %c0_i32_0 = arith.constant 0 : i32
    %c0_i32_1 = arith.constant 0 : i32
    return %c0_i32, %c0_i32_0 : i32, i32
  }
  func.func @transform_3(%arg0: i32) -> (i32, i32, i32) {
    %c0_i32 = arith.constant 0 : i32
    %c0_i32_0 = arith.constant 0 : i32
    %c0_i32_1 = arith.constant 0 : i32
    %c0_i32_2 = arith.constant 0 : i32
    return %c0_i32, %c0_i32_0, %c0_i32_1 : i32, i32, i32
  }
  func.func @transform_4(%arg0: i32) -> (i32, i32, i32) {
    %c0_i32 = arith.constant 0 : i32
    %c0_i32_0 = arith.constant 0 : i32
    %c0_i32_1 = arith.constant 0 : i32
    %c0_i32_2 = arith.constant 0 : i32
    return %c0_i32, %c0_i32_0, %c0_i32_1 : i32, i32, i32
  }
  func.func @transform_5(%arg0: i32) -> (i32, i32, i32) {
    %c0_i32 = arith.constant 0 : i32
    %c0_i32_0 = arith.constant 0 : i32
    %c0_i32_1 = arith.constant 0 : i32
    %c0_i32_2 = arith.constant 0 : i32
    return %c0_i32, %c0_i32_0, %c0_i32_1 : i32, i32, i32
  }
  func.func @transform_6(%arg0: i32) -> (i32, i32, i32) {
    %c0_i32 = arith.constant 0 : i32
    %c0_i32_0 = arith.constant 0 : i32
    %c0_i32_1 = arith.constant 0 : i32
    %c0_i32_2 = arith.constant 0 : i32
    return %c0_i32, %c0_i32_0, %c0_i32_1 : i32, i32, i32
  }
  func.func @transform_7(%arg0: i32) -> (i32, i32) {
    %c0_i32 = arith.constant 0 : i32
    %c0_i32_0 = arith.constant 0 : i32
    %c0_i32_1 = arith.constant 0 : i32
    return %c0_i32, %c0_i32_0 : i32, i32
  }
}

</mosaic_0001>

<bundles_post_ra>
// kernel: transformer_forward.1
= control target key start
LH: loop header
LB: loop body
LE: loop exit
PB: predicated region body
PF: predicated region fallthrough
CT: control target
= control target key end

     0   :  { %vm28_vm0 = vcmask 326656   ;;  %vm154_vm1 = vcmask 261120   ;;  %v4457_v49 = vmov 0.0   ;;  %vm4458_vm2 = vmmov 0   ;;  %s4459_s10 = smov 120   ;;  %s4460_s11 = smov 112   ;;  %s5177_s2 = inlined_call_operand.vmem [shape: f32[40,32], index: 2, kind: input, shape index: {}]   ;;  %s5178_s0 = inlined_call_operand.vmem [shape: f32[16,40], index: 0, kind: input, shape index: {}]   ;;  %s5179_s1 = inlined_call_operand.vmem [shape: f32[40,128], index: 1, kind: input, shape index: {}]   ;;  %s5180_s3 = inlined_call_operand.vmem [shape: f32[2,32,96], index: 3, kind: input, shape index: {}]   ;;  %s5181_s4 = inlined_call_operand.vmem [shape: f32[2,32,32], index: 4, kind: input, shape index: {}]   ;;  %s5182_s5 = inlined_call_operand.vmem [shape: f32[2,32,64], index: 5, kind: input, shape index: {}]   ;;  %s5183_s6 = inlined_call_operand.vmem [shape: f32[2,64,32], index: 6, kind: input, shape index: {}]   ;;  %s5184_s7 = inlined_call_operand.vmem [shape: f32[16,32], index: 7, kind: output, shape index: {}]  }
   0x1   :  { %v66_v0 = vld [vmem:[%s5177_s2 + $0x20] sm:$0xff]  ;;  %v65_v1 = vld [vmem:[%s5177_s2 + $0x18] sm:$0xff]  ;;  %v64_v3 = vld [vmem:[%s5177_s2 + $0x10] sm:$0xff]  ;;  %4100 = vmatprep.subr.mxu1 %v4457_v49  ;;  %4102 = vmatprep.mubr.msk.f32.mxu1 %vm4458_vm2, %v4457_v49  ;;  %s4461_s12 = smov 104   ;;  %s4462_s13 = smov 96   ;;  %vm315_vm3 = vcmask 64512  }
   0x2   :  { %4076 = vmatprep.subr.mxu0 %v66_v0  ;;  %v4518_v2 = vld [vmem:[%s5178_s0] sm:$0xff]  ;;  %v63_v4 = vld [vmem:[%s5177_s2 + $0x8] sm:$0xff]  ;;  %v3844_v8 = vld [vmem:[%s5179_s1 + $0x10] ss:$0 sm:$0xff]  ;;  %s4465_s14 = smov 64   ;;  %s4466_s21 = smov 8  }
   0x3   :  { %4077 = vmatpush3.msra.mxu0 %v66_v0  ;;  %4086 = vmatprep.mubr.msk.f32.mxu0 %vm28_vm0, %v4518_v2  ;;  %v62_v5 = vld [vmem:[%s5177_s2] sm:$0xff]  ;;  %v4534_v6 = vld [vmem:[%s5178_s0 + $0x8] sm:$0xff]  ;;  %v205_v28 = vld [vmem:[%s5180_s3 + $0x18] sm:$0xff]  ;;  %v29_v62 = vsel %vm28_vm0, %v4518_v2, 0.0  ;;  %s4467_s22 = smov 16   ;;  %s4468_s23 = smov 24  }
   0x4   :  { %4078 = vmatprep.subr.mxu0 %v65_v1  ;;  %v57_v10 = vld [vmem:[%s5179_s1] sm:$0xff]  ;;  %v58_v13 = vld [vmem:[%s5179_s1 + $0x8] sm:$0xff]  ;;  %v204_v29 = vld [vmem:[%s5180_s3 + $0x10] sm:$0xff]  ;;  %v32_v63 = vsel %vm28_vm0, %v4534_v6, 0.0  ;;  %vm1644_vm8 = vcmask 130048   ;;  %vm1647_vm9 = vcmask 195584  }
   0x5   :  { %4079 = vmatpush3.msra.mxu0 %v65_v1  ;;  %v203_v30 = vld [vmem:[%s5180_s3 + $0x8] sm:$0xff]  ;;  %v202_v31 = vld [vmem:[%s5180_s3] sm:$0xff]  ;;  %v3847_v39 = vld [vmem:[%s5179_s1 + $0x11] ss:$0 sm:$0xff]  ;;  %vm1898_vm10 = vcmask 523264  }
   0x6   :  { %4080 = vmatprep.subr.mxu0 %v64_v3  ;;  %v3848_v41 = vld [vmem:[%s5179_s1 + $0x12] ss:$0 sm:$0xff]  ;;  %v3849_v48 = vld [vmem:[%s5179_s1 + $0x13] ss:$0 sm:$0xff] }
   0x7   :  { %4081 = vmatpush3.msra.mxu0 %v64_v3 }
   0x8   :  { %4082 = vmatprep.subr.mxu0 %v63_v4 }
   0x9   :  { %4083 = vmatpush3.msra.mxu0 %v63_v4 }
   0xa   :  { %4084 = vmatprep.subr.mxu0 %v62_v5 }
   0xb   :  { %4085 = vmatpush3.msra.mxu0 %v62_v5 }
   0xc   :  { %4087 = vmatmul.mubr.msk.f32.vlgmr.msra.gmra.mxu0 %vm28_vm0, %v4534_v6  ;;  %4089 = vmatprep.subr.mxu0 %v205_v28 }
   0xd   :  { %4090 = vmatpush3.msra.mxu0 %v205_v28 }
   0xe   :  { %4091 = vmatprep.subr.mxu0 %v204_v29 }
   0xf   :  { %4092 = vmatpush3.msra.mxu0 %v204_v29 }
  0x10   :  { %4093 = vmatprep.subr.mxu0 %v203_v30 }
  0x11   :  { %4094 = vmatpush3.msra.mxu0 %v203_v30 }
  0x12   :  { %4095 = vmatprep.subr.mxu0 %v202_v31 }
  0x13   :  { %4096 = vmatpush3.msra.mxu0 %v202_v31 }
  0x14   :  { %4105 = vmatprep.subr.mxu0 %v4457_v49 }
  0xcc   :  { %v4088_v7 = vpop.f32.mrf.mxu0 }
  0xcd   :  { %v149_v11 = vadd.f32 %v4088_v7, %v3844_v8  ;;  %v4463_v7 = vmov 0  }
  0xce   :  { %v143_v9 = vpop.f32.mrf.mxu0 }
  0xcf   :  { %v144_v12 = vadd.f32 %v3844_v8, %v143_v9  ;;  %v153_v16 = vadd.f32 %v149_v11, %v58_v13 }
  0xd1   :  { %v152_v14 = vadd.f32 %v144_v12, %v57_v10  ;;  %v158_v17 = vsel %vm154_vm1, %v153_v16, 0.0 }
  0xd3   :  { %v155_v15 = vsel %vm154_vm1, %v152_v14, 0.0 }
  0xd4   :  { %156 = vadd.xlane.f32.xlu0 %v155_v15 }
  0xd8   :  { %159 = vadd.xlane.f32.xlu0 %v158_v17 }
 0x15d   :  { %v157_v18 = vpop.xlane.xlu0 %156 }
 0x15e   :  { %v162_v19 = vmul.f32 0.03125, %v157_v18 }
 0x160   :  { %v164_v20 = vsub.f32 %v152_v14, %v162_v19  ;;  %v51_v19 = vlaneseq }
 0x161   :  { %v160_v21 = vpop.xlane.xlu0 %159 }
 0x162   :  { %v163_v22 = vmul.f32 0.03125, %v160_v21  ;;  %v166_v23 = vmul.f32 %v164_v20, %v164_v20 }
 0x164   :  { %v165_v24 = vsub.f32 %v153_v16, %v163_v22  ;;  %v168_v25 = vsel %vm154_vm1, %v166_v23, 0.0  ;;  %v52_v23 = vand.u32 127, %v51_v19 }
 0x165   :  { %169 = vadd.xlane.f32.xlu1 %v168_v25  ;;  %v306_v25 = vshrl.u32 %v51_v19, 7 }
 0x166   :  { %v167_v26 = vmul.f32 %v165_v24, %v165_v24 }
 0x167   :  { %v307_v29 = vsub.s32 0, %v306_v25 }
 0x168   :  { %v171_v27 = vsel %vm154_vm1, %v167_v26, 0.0  ;;  %v4464_v26 = vmov -10000.0  }
 0x169   :  { %172 = vadd.xlane.f32.xlu1 %v171_v27 }
 0x1ee   :  { %v170_v32 = vpop.xlane.xlu1 %169 }
 0x1ef   :  { %v174_v33 = vmul.f32 0.03125, %v170_v32 }
 0x1f1   :  { %v176_v34 = vadd.f32 1e-12, %v174_v33 }
 0x1f2   :  { %v173_v35 = vpop.xlane.xlu1 %172 }
 0x1f3   :  { %4365 = vrsqrt.f32 %v176_v34  ;;  %v175_v36 = vmul.f32 0.03125, %v173_v35 }
 0x1f5   :  { %v177_v37 = vadd.f32 1e-12, %v175_v36 }
 0x1f7   :  { %4367 = vrsqrt.f32 %v177_v37 }
 0x200   :  { %v4366_v38 = vpop.eup %4365 }
 0x201   :  { %v180_v40 = vmul.f32 %v4366_v38, %v164_v20 }
 0x203   :  { %v186_v42 = vmul.f32 %v3847_v39, %v180_v40 }
 0x204   :  { %v4368_v43 = vpop.eup %4367 }
 0x205   :  { %v181_v44 = vmul.f32 %v4368_v43, %v165_v24  ;;  %v4569_v45 = vadd.f32 %v3848_v41, %v186_v42 }
 0x207   :  { %v187_v46 = vmul.f32 %v3847_v39, %v181_v44  ;;  %4097 = vmatprep.mubr.msk.f32.mxu0 %vm154_vm1, %v4569_v45 }
 0x209   :  { %v4573_v47 = vadd.f32 %v3848_v41, %v187_v46 }
 0x20b   :  { %4098 = vmatmul.mubr.msk.f32.vlgmr.msra.gmra.mxu0 %vm154_vm1, %v4573_v47 }
 0x20c   :  { %4107 = vmatprep.mubr.msk.f32.mxu0 %vm4458_vm2, %v4457_v49 }
 0x2cb   :  { %v4099_v50 = vpop.f32.mrf.mxu0 }
 0x2cc   :  { %v4582_v51 = vadd.f32 %v4099_v50, %v3849_v48 }
 0x2cd   :  { %v282_v52 = vpop.f32.mrf.mxu0 }
 0x2ce   :  { %v4588_v53 = vadd.f32 %v3849_v48, %v282_v52  ;;  %295 = vrot.lane.b32.xlu1 %v4582_v51, %s4459_s10 }
 0x2d0   :  { %293 = vrot.lane.b32.xlu0 %v4588_v53, %s4459_s10 }
 0x2d2   :  { %297 = vrot.lane.b32.xlu1 %v4588_v53, %s4460_s11 }
 0x2d4   :  { %301 = vrot.lane.b32.xlu0 %v4588_v53, %s4461_s12 }
 0x2d6   :  { %299 = vrot.lane.b32.xlu1 %v4582_v51, %s4460_s11 }
 0x2d8   :  { %313 = vrot.lane.b32.xlu0 %v4588_v53, %s4462_s13 }
 0x2da   :  { %303 = vrot.lane.b32.xlu1 %v4582_v51, %s4461_s12 }
 0x2de   :  { %390 = vrot.lane.b32.xlu1 %v4582_v51, %s4462_s13 }
 0x340   :  { %v4606_v54 = vpop.permute.xlu1 %295 }
 0x341   :  { %542 = vrot.lane.b32.xlu1 %v4606_v54, %s4462_s13 }
 0x342   :  { %v4610_v55 = vpop.permute.xlu0 %293 }
 0x343   :  { %466 = vrot.lane.b32.xlu0 %v4610_v55, %s4462_s13 }
 0x344   :  { %v4614_v56 = vpop.permute.xlu1 %297 }
 0x346   :  { %v4616_v57 = vpop.permute.xlu0 %301 }
 0x347   :  { %618 = vrot.lane.b32.xlu0 %v4614_v56, %s4462_s13 }
 0x348   :  { %v4620_v58 = vpop.permute.xlu1 %299 }
 0x349   :  { %694 = vrot.lane.b32.xlu1 %v4620_v58, %s4462_s13 }
 0x34a   :  { %v314_v59 = vpop.permute.xlu0 %313 }
 0x34b   :  { %770 = vrot.lane.b32.xlu0 %v4616_v57, %s4462_s13  ;;  %4101 = vmatpush3.xpose.msk.msra.mxu1 %vm315_vm3, %v314_v59 }
 0x34c   :  { %v4627_v60 = vpop.permute.xlu1 %303  ;;  %4110 = vmatprep.subr.mxu1 %v4457_v49 }
 0x34d   :  { %846 = vrot.lane.b32.xlu1 %v4627_v60, %s4462_s13 }
 0x34e   :  { %4103 = vmatmul.mubr.msk.f32.vlgmr.msra.gmra.mxu1 %vm315_vm3, %v4588_v53 }
 0x34f   :  { %4112 = vmatprep.mubr.msk.f32.mxu1 %vm4458_vm2, %v4457_v49 }
 0x350   :  { %v391_v61 = vpop.permute.xlu1 %390 }
 0x351   :  { %4106 = vmatpush3.xpose.msk.msra.mxu0 %vm315_vm3, %v391_v61 }
 0x352   :  { %4115 = vmatprep.subr.mxu0 %v4457_v49 }
 0x354   :  { %4108 = vmatmul.mubr.msk.f32.vlgmr.msra.gmra.mxu0 %vm315_vm3, %v4582_v51 }
 0x355   :  { %4117 = vmatprep.mubr.msk.f32.mxu0 %vm4458_vm2, %v4457_v49 }
 0x36a   :  { %30 = vadd.xlane.f32.xlu0 %v29_v62 }
 0x371   :  { %33 = vadd.xlane.f32.xlu1 %v32_v63 }
 0x3b3   :  { %v543_v0 = vpop.permute.xlu1 %542 }
 0x3b4   :  { %4116 = vmatpush3.xpose.msk.msra.mxu0 %vm315_vm3, %v543_v0 }
 0x3b5   :  { %v467_v1 = vpop.permute.xlu0 %466  ;;  %4125 = vmatprep.subr.mxu0 %v4457_v49 }
 0x3b6   :  { %4111 = vmatpush3.xpose.msk.msra.mxu1 %vm315_vm3, %v467_v1 }
 0x3b7   :  { %4118 = vmatmul.mubr.msk.f32.vlgmr.msra.gmra.mxu0 %vm315_vm3, %v4606_v54  ;;  %4120 = vmatprep.subr.mxu1 %v4457_v49 }
 0x3b8   :  { %4127 = vmatprep.mubr.msk.f32.mxu0 %vm4458_vm2, %v4457_v49 }
 0x3b9   :  { %4113 = vmatmul.mubr.msk.f32.vlgmr.msra.gmra.mxu1 %vm315_vm3, %v4610_v55  ;;  %v619_v2 = vpop.permute.xlu0 %618 }
 0x3ba   :  { %4121 = vmatpush3.xpose.msk.msra.mxu1 %vm315_vm3, %v619_v2  ;;  %4122 = vmatprep.mubr.msk.f32.mxu1 %vm4458_vm2, %v4457_v49 }
 0x3bb   :  { %v695_v3 = vpop.permute.xlu1 %694  ;;  %4130 = vmatprep.subr.mxu1 %v4457_v49 }
 0x3bc   :  { %4126 = vmatpush3.xpose.msk.msra.mxu0 %vm315_vm3, %v695_v3 }
 0x3bd   :  { %4123 = vmatmul.mubr.msk.f32.vlgmr.msra.gmra.mxu1 %vm315_vm3, %v4614_v56  ;;  %v771_v4 = vpop.permute.xlu0 %770  ;;  %4135 = vmatprep.subr.mxu0 %v4457_v49 }
 0x3be   :  { %4131 = vmatpush3.xpose.msk.msra.mxu1 %vm315_vm3, %v771_v4  ;;  %4132 = vmatprep.mubr.msk.f32.mxu1 %vm4458_vm2, %v4457_v49 }
 0x3bf   :  { %4128 = vmatmul.mubr.msk.f32.vlgmr.msra.gmra.mxu0 %vm315_vm3, %v4620_v58  ;;  %v847_v5 = vpop.permute.xlu1 %846  ;;  %4140 = vmatprep.subr.mxu1 %v4457_v49 }
 0x3c0   :  { %4136 = vmatpush3.xpose.msk.msra.mxu0 %vm315_vm3, %v847_v5  ;;  %4137 = vmatprep.mubr.msk.f32.mxu0 %vm4458_vm2, %v4457_v49 }
 0x3c1   :  { %4133 = vmatmul.mubr.msk.f32.vlgmr.msra.gmra.mxu1 %vm315_vm3, %v4616_v57  ;;  %4145 = vmatprep.subr.mxu0 %v4457_v49 }
 0x3c2   :  { %4142 = vmatprep.mubr.msk.f32.mxu1 %vm4458_vm2, %v4457_v49 }
 0x3c3   :  { %4138 = vmatmul.mubr.msk.f32.vlgmr.msra.gmra.mxu0 %vm315_vm3, %v4627_v60 }
 0x3c4   :  { %4147 = vmatprep.mubr.msk.f32.mxu0 %vm4458_vm2, %v4457_v49 }
 0x3f3   :  { %v31_v6 = vpop.xlane.xlu0 %30 }
 0x3f4   :  { %vm35_vm4 = vcmp.ne.f32.partialorder %v31_v6, 0.0 }
 0x3f5   :  { %v37_v8 = vsel %vm35_vm4, 1, %v4463_v7 }
 0x3f6   :  { %v39_v9 = vrot.slane %v37_v8, 4 }
 0x3f8   :  { %v40_v10 = vadd.s32 %v39_v9, %v37_v8 }
 0x3fa   :  { %v34_v11 = vpop.xlane.xlu1 %33  ;;  %v41_v13 = vrot.slane %v40_v10, 2 }
 0x3fb   :  { %vm36_vm5 = vcmp.ne.f32.partialorder %v34_v11, 0.0 }
 0x3fc   :  { %v38_v12 = vsel %vm36_vm5, 1, %v4463_v7  ;;  %v42_v16 = vadd.s32 %v41_v13, %v40_v10 }
 0x3fd   :  { %v45_v14 = vrot.slane %v38_v12, 4 }
 0x3fe   :  { %v43_v20 = vrot.slane %v42_v16, 1 }
 0x3ff   :  { %v46_v15 = vadd.s32 %v45_v14, %v38_v12 }
 0x400   :  { %v44_v24 = vadd.s32 %v43_v20, %v42_v16 }
 0x401   :  { %v47_v17 = vrot.slane %v46_v15, 2 }
 0x402   :  { %vm53_vm7 = vcmp.lt.s32.totalorder %v52_v23, %v44_v24 }
 0x403   :  { %v48_v18 = vadd.s32 %v47_v17, %v46_v15  ;;  %v55_v30 = vsel %vm53_vm7, 0.0, %v4464_v26 }
 0x404   :  { %v4684_v33 = vrot.slane %v55_v30, %v307_v29 }
 0x405   :  { %v49_v21 = vrot.slane %v48_v18, 1 }
 0x407   :  { %v50_v22 = vadd.s32 %v49_v21, %v48_v18 }
 0x409   :  { %vm54_vm6 = vcmp.lt.s32.totalorder %v52_v23, %v50_v22 }
 0x40a   :  { %v56_v27 = vsel %vm54_vm6, 0.0, %v4464_v26 }
 0x40b   :  { %v4682_v32 = vrot.slane %v56_v27, %v307_v29 }
 0x40e   :  { %v386_v28 = vpop.f32.mrf.mxu1 }
 0x40f   :  { %v387_v37 = vadd.f32 %v386_v28, %v4684_v33 }
 0x410   :  { %v4104_v31 = vpop.f32.mrf.mxu1 }
 0x411   :  { %v922_v39 = vsel %vm315_vm3, %v387_v37, -inf }
 0x414   :  { %v462_v34 = vpop.f32.mrf.mxu0 }
 0x415   :  { %v463_v35 = vadd.f32 %v462_v34, %v4682_v32 }
 0x416   :  { %v4109_v36 = vpop.f32.mrf.mxu0 }
 0x417   :  { %v925_v38 = vsel %vm315_vm3, %v463_v35, -inf }
 0x418   :  { %926 = vmax.xlane.f32.xlu0 %v925_v38 }
 0x41c   :  { %923 = vmax.xlane.f32.xlu0 %v922_v39 }
 0x477   :  { %v614_v40 = vpop.f32.mrf.mxu0 }
 0x478   :  { %v615_v41 = vadd.f32 %v614_v40, %v4682_v32 }
 0x479   :  { %v538_v42 = vpop.f32.mrf.mxu1  ;;  %v4119_v43 = vpop.f32.mrf.mxu0 }
 0x47a   :  { %v539_v44 = vadd.f32 %v538_v42, %v4684_v33  ;;  %v931_v46 = vsel %vm315_vm3, %v615_v41, -inf }
 0x47b   :  { %932 = vmax.xlane.f32.xlu1 %v931_v46  ;;  %v4114_v48 = vpop.f32.mrf.mxu1 }
 0x47c   :  { %v928_v50 = vsel %vm315_vm3, %v539_v44, -inf }
 0x47d   :  { %v690_v52 = vpop.f32.mrf.mxu1  ;;  %929 = vmax.xlane.f32.xlu0 %v928_v50 }
 0x47e   :  { %v691_v59 = vadd.f32 %v690_v52, %v4684_v33 }
 0x47f   :  { %v4124_v61 = vpop.f32.mrf.mxu1  ;;  %v766_v62 = vpop.f32.mrf.mxu0 }
 0x480   :  { %v767_v63 = vadd.f32 %v766_v62, %v4682_v32  ;;  %v934_v0 = vsel %vm315_vm3, %v691_v59, -inf }
 0x481   :  { %v4129_v1 = vpop.f32.mrf.mxu0  ;;  %v842_v2 = vpop.f32.mrf.mxu1  ;;  %935 = vmax.xlane.f32.xlu0 %v934_v0 }
 0x482   :  { %v843_v3 = vadd.f32 %v842_v2, %v4684_v33  ;;  %v937_v4 = vsel %vm315_vm3, %v767_v63, -inf }
 0x483   :  { %v918_v5 = vpop.f32.mrf.mxu0  ;;  %938 = vmax.xlane.f32.xlu1 %v937_v4  ;;  %v4134_v6 = vpop.f32.mrf.mxu1 }
 0x484   :  { %v919_v7 = vadd.f32 %v918_v5, %v4682_v32  ;;  %v940_v8 = vsel %vm315_vm3, %v843_v3, -inf }
 0x485   :  { %v4139_v9 = vpop.f32.mrf.mxu0  ;;  %941 = vmax.xlane.f32.xlu0 %v940_v8 }
 0x486   :  { %v943_v10 = vsel %vm315_vm3, %v919_v7, -inf }
 0x487   :  { %944 = vmax.xlane.f32.xlu1 %v943_v10 }
 0x498   :  { %1086 = vrot.lane.b32.xlu1 %v4582_v51, %s4465_s14 }
 0x49b   :  { %1010 = vrot.lane.b32.xlu0 %v4588_v53, %s4465_s14 }
 0x49c   :  { %1162 = vrot.lane.b32.xlu1 %v4610_v55, %s4465_s14 }
 0x49f   :  { %1314 = vrot.lane.b32.xlu0 %v4614_v56, %s4465_s14 }
 0x4a0   :  { %1238 = vrot.lane.b32.xlu1 %v4606_v54, %s4465_s14 }
 0x4a1   :  { %v927_v11 = vpop.xlane.xlu0 %926 }
 0x4a2   :  { %v947_v51 = vsub.f32 %v463_v35, %v927_v11 }
 0x4a4   :  { %1390 = vrot.lane.b32.xlu1 %v4620_v58, %s4465_s14  ;;  %v956_v15 = vmul.f32 1.442695, %v947_v51 }
 0x4a5   :  { %v924_v12 = vpop.xlane.xlu0 %923 }
 0x4a6   :  { %v946_v13 = vsub.f32 %v387_v37, %v924_v12 }
 0x4a8   :  { %v954_v14 = vmul.f32 1.442695, %v946_v13 }
 0x4aa   :  { %4369 = vpow2.f32 %v954_v14 }
 0x4ab   :  { %4371 = vpow2.f32 %v956_v15 }
 0x4b7   :  { %v4714_v53 = vpop.eup %4369 }
 0x4b8   :  { %v970_v55 = vsel %vm315_vm3, %v4714_v53, 0.0  ;;  %v4718_v56 = vpop.eup %4371 }
 0x4b9   :  { %v973_v54 = vsel %vm315_vm3, %v4718_v56, 0.0 }
 0x4be   :  { %971 = vadd.xlane.f32.xlu0 %v970_v55 }
 0x4c8   :  { %974 = vadd.xlane.f32.xlu1 %v973_v54 }
 0x504   :  { %v933_v58 = vpop.xlane.xlu1 %932 }
 0x505   :  { %v949_v16 = vsub.f32 %v615_v41, %v933_v58 }
 0x506   :  { %v930_v17 = vpop.xlane.xlu0 %929 }
 0x507   :  { %v960_v18 = vmul.f32 1.442695, %v949_v16  ;;  %v948_v19 = vsub.f32 %v539_v44, %v930_v17 }
 0x509   :  { %4373 = vpow2.f32 %v960_v18  ;;  %v958_v20 = vmul.f32 1.442695, %v948_v19 }
 0x50a   :  { %v936_v21 = vpop.xlane.xlu0 %935 }
 0x50b   :  { %4375 = vpow2.f32 %v958_v20  ;;  %v950_v22 = vsub.f32 %v691_v59, %v936_v21 }
 0x50c   :  { %v939_v23 = vpop.xlane.xlu1 %938 }
 0x50d   :  { %v962_v24 = vmul.f32 1.442695, %v950_v22  ;;  %v951_v25 = vsub.f32 %v767_v63, %v939_v23  ;;  %v1653_v22 = vld [vmem:[%s5181_s4 + $0x18] sm:$0xff]  ;;  %v1652_v23 = vld [vmem:[%s5181_s4 + $0x10] sm:$0xff] }
 0x50e   :  { %v942_v26 = vpop.xlane.xlu0 %941 }
 0x50f   :  { %4377 = vpow2.f32 %v962_v24  ;;  %v964_v27 = vmul.f32 1.442695, %v951_v25  ;;  %v952_v28 = vsub.f32 %v843_v3, %v942_v26  ;;  %v1651_v24 = vld [vmem:[%s5181_s4 + $0x8] sm:$0xff]  ;;  %v1650_v25 = vld [vmem:[%s5181_s4] sm:$0xff] }
 0x510   :  { %v945_v29 = vpop.xlane.xlu1 %944 }
 0x511   :  { %4379 = vpow2.f32 %v964_v27  ;;  %v966_v30 = vmul.f32 1.442695, %v952_v28  ;;  %v953_v31 = vsub.f32 %v919_v7, %v945_v29 }
 0x512   :  { %v1011_v34 = vpop.permute.xlu0 %1010 }
 0x513   :  { %4381 = vpow2.f32 %v966_v30  ;;  %v968_v35 = vmul.f32 1.442695, %v953_v31  ;;  %4141 = vmatpush3.msra.mxu1 %v1011_v34 }
 0x514   :  { %v1087_v36 = vpop.permute.xlu1 %1086  ;;  %4150 = vmatprep.subr.mxu1 %v4457_v49 }
 0x515   :  { %4383 = vpow2.f32 %v968_v35  ;;  %4146 = vmatpush3.msra.mxu0 %v1087_v36 }
 0x516   :  { %v4374_v37 = vpop.eup %4373  ;;  %4155 = vmatprep.subr.mxu0 %v4457_v49  ;;  %v1315_v61 = vpop.permute.xlu0 %1314 }
 0x517   :  { %v979_v38 = vsel %vm315_vm3, %v4374_v37, 0.0 }
 0x518   :  { %v4376_v39 = vpop.eup %4375  ;;  %980 = vadd.xlane.f32.xlu1 %v979_v38  ;;  %v1163_v59 = vpop.permute.xlu1 %1162 }
 0x519   :  { %v976_v40 = vsel %vm315_vm3, %v4376_v39, 0.0 }
 0x51a   :  { %977 = vadd.xlane.f32.xlu0 %v976_v40 }
 0x51c   :  { %v4378_v41 = vpop.eup %4377  ;;  %v1239_v62 = vpop.permute.xlu1 %1238 }
 0x51d   :  { %v982_v42 = vsel %vm315_vm3, %v4378_v41, 0.0 }
 0x51e   :  { %v4380_v43 = vpop.eup %4379  ;;  %983 = vadd.xlane.f32.xlu0 %v982_v42 }
 0x51f   :  { %v985_v44 = vsel %vm315_vm3, %v4380_v43, 0.0 }
 0x520   :  { %v4728_v46 = vpop.eup %4381  ;;  %986 = vadd.xlane.f32.xlu1 %v985_v44  ;;  %v1391_v0 = vpop.permute.xlu1 %1390 }
 0x521   :  { %v988_v48 = vsel %vm315_vm3, %v4728_v46, 0.0 }
 0x522   :  { %v4732_v50 = vpop.eup %4383  ;;  %989 = vadd.xlane.f32.xlu0 %v988_v48 }
 0x523   :  { %v991_v52 = vsel %vm315_vm3, %v4732_v50, 0.0 }
 0x524   :  { %992 = vadd.xlane.f32.xlu1 %v991_v52 }
 0x535   :  { %1542 = vrot.lane.b32.xlu1 %v4627_v60, %s4465_s14 }
 0x538   :  { %1466 = vrot.lane.b32.xlu0 %v4616_v57, %s4465_s14 }
 0x547   :  { %v972_v63 = vpop.xlane.xlu0 %971 }
 0x548   :  { %4385 = vrcp.f32 %v972_v63  ;;  %v3876_v63 = vld [vmem:[%s5179_s1 + $0x14] ss:$0 sm:$0xff] }
 0x551   :  { %v975_v1 = vpop.xlane.xlu1 %974 }
 0x552   :  { %4387 = vrcp.f32 %v975_v1 }
 0x555   :  { %v4386_v2 = vpop.eup %4385 }
 0x556   :  { %v1002_v3 = vmul.f32 %v4386_v2, %v4714_v53 }
 0x558   :  { %4143 = vmatmul.mubr.msk.f32.vlgmr.msra.gmra.mxu1 %vm315_vm3, %v1002_v3 }
 0x559   :  { %4151 = vmatpush3.msra.mxu1 %v1163_v59  ;;  %4152 = vmatprep.mubr.msk.f32.mxu1 %vm4458_vm2, %v4457_v49 }
 0x55a   :  { %4160 = vmatprep.subr.mxu1 %v4457_v49 }
 0x55f   :  { %v4388_v57 = vpop.eup %4387 }
 0x560   :  { %v1003_v60 = vmul.f32 %v4388_v57, %v4718_v56 }
 0x562   :  { %4148 = vmatmul.mubr.msk.f32.vlgmr.msra.gmra.mxu0 %vm315_vm3, %v1003_v60 }
 0x563   :  { %4156 = vmatpush3.msra.mxu0 %v1239_v62  ;;  %4157 = vmatprep.mubr.msk.f32.mxu0 %vm4458_vm2, %v4457_v49 }
 0x564   :  { %4165 = vmatprep.subr.mxu0 %v4457_v49 }
 0x5a1   :  { %v981_v4 = vpop.xlane.xlu1 %980 }
 0x5a2   :  { %4389 = vrcp.f32 %v981_v4 }
 0x5a3   :  { %v978_v5 = vpop.xlane.xlu0 %977 }
 0x5a4   :  { %4391 = vrcp.f32 %v978_v5 }
 0x5a7   :  { %v984_v6 = vpop.xlane.xlu0 %983 }
 0x5a8   :  { %4393 = vrcp.f32 %v984_v6 }
 0x5a9   :  { %v987_v7 = vpop.xlane.xlu1 %986 }
 0x5aa   :  { %4395 = vrcp.f32 %v987_v7 }
 0x5ab   :  { %v990_v8 = vpop.xlane.xlu0 %989 }
 0x5ac   :  { %4397 = vrcp.f32 %v990_v8 }
 0x5ad   :  { %v993_v9 = vpop.xlane.xlu1 %992 }
 0x5ae   :  { %4399 = vrcp.f32 %v993_v9 }
 0x5af   :  { %v4390_v10 = vpop.eup %4389  ;;  %v1467_v53 = vpop.permute.xlu0 %1466 }
 0x5b0   :  { %v1005_v11 = vmul.f32 %v4390_v10, %v4374_v37 }
 0x5b1   :  { %v4392_v12 = vpop.eup %4391  ;;  %v1543_v54 = vpop.permute.xlu1 %1542 }
 0x5b2   :  { %4158 = vmatmul.mubr.msk.f32.vlgmr.msra.gmra.mxu0 %vm315_vm3, %v1005_v11  ;;  %v1004_v13 = vmul.f32 %v4392_v12, %v4376_v39 }
 0x5b3   :  { %4166 = vmatpush3.msra.mxu0 %v1391_v0  ;;  %4167 = vmatprep.mubr.msk.f32.mxu0 %vm4458_vm2, %v4457_v49 }
 0x5b4   :  { %4153 = vmatmul.mubr.msk.f32.vlgmr.msra.gmra.mxu1 %vm315_vm3, %v1004_v13  ;;  %4175 = vmatprep.subr.mxu0 %v4457_v49 }
 0x5b5   :  { %v4394_v14 = vpop.eup %4393  ;;  %4161 = vmatpush3.msra.mxu1 %v1315_v61  ;;  %4162 = vmatprep.mubr.msk.f32.mxu1 %vm4458_vm2, %v4457_v49 }
 0x5b6   :  { %4170 = vmatprep.subr.mxu1 %v4457_v49  ;;  %v1006_v51 = vmul.f32 %v4394_v14, %v4378_v41 }
 0x5b7   :  { %v4396_v15 = vpop.eup %4395 }
 0x5b8   :  { %4163 = vmatmul.mubr.msk.f32.vlgmr.msra.gmra.mxu1 %vm315_vm3, %v1006_v51  ;;  %v1007_v55 = vmul.f32 %v4396_v15, %v4380_v43  ;;  %v1781_v51 = vld [vmem:[%s5182_s5 + $0x10] sm:$0xff]  ;;  %v1780_v15 = vld [vmem:[%s5182_s5 + $0x8] sm:$0xff] }
 0x5b9   :  { %v4398_v56 = vpop.eup %4397  ;;  %4171 = vmatpush3.msra.mxu1 %v1467_v53  ;;  %4172 = vmatprep.mubr.msk.f32.mxu1 %vm4458_vm2, %v4457_v49  ;;  %v1779_v53 = vld [vmem:[%s5182_s5] sm:$0xff] }
 0x5ba   :  { %4168 = vmatmul.mubr.msk.f32.vlgmr.msra.gmra.mxu0 %vm315_vm3, %v1007_v55  ;;  %v1008_v58 = vmul.f32 %v4398_v56, %v4728_v46  ;;  %4180 = vmatprep.subr.mxu1 %v1653_v22 }
 0x5bb   :  { %v4400_v16 = vpop.eup %4399  ;;  %4176 = vmatpush3.msra.mxu0 %v1543_v54  ;;  %4177 = vmatprep.mubr.msk.f32.mxu0 %vm4458_vm2, %v4457_v49 }
 0x5bc   :  { %4173 = vmatmul.mubr.msk.f32.vlgmr.msra.gmra.mxu1 %vm315_vm3, %v1008_v58  ;;  %v1009_v17 = vmul.f32 %v4400_v16, %v4732_v50 }
 0x5bd   :  { %4181 = vmatpush3.msra.mxu1 %v1653_v22 }
 0x5be   :  { %4178 = vmatmul.mubr.msk.f32.vlgmr.msra.gmra.mxu0 %vm315_vm3, %v1009_v17  ;;  %4182 = vmatprep.subr.mxu1 %v1652_v23 }
 0x5bf   :  { %4183 = vmatpush3.msra.mxu1 %v1652_v23 }
 0x5c0   :  { %4184 = vmatprep.subr.mxu1 %v1651_v24 }
 0x5c1   :  { %4185 = vmatpush3.msra.mxu1 %v1651_v24 }
 0x5c2   :  { %4186 = vmatprep.subr.mxu1 %v1650_v25 }
 0x5c3   :  { %4187 = vmatpush3.msra.mxu1 %v1650_v25 }
 0x618   :  { %v1082_v18 = vpop.f32.mrf.mxu1 }
 0x61a   :  { %v4144_v19 = vpop.f32.mrf.mxu1 }
 0x61b   :  { %v3879_v19 = vld [vmem:[%s5179_s1 + $0x15] ss:$0 sm:$0xff] }
 0x622   :  { %v1158_v20 = vpop.f32.mrf.mxu0 }
 0x624   :  { %v4149_v21 = vpop.f32.mrf.mxu0 }
 0x625   :  { %v3880_v21 = vld [vmem:[%s5179_s1 + $0x16] ss:$0 sm:$0xff] }
 0x672   :  { %v1310_v26 = vpop.f32.mrf.mxu0 }
 0x673   :  { %1622 = vrot.lane.b32.xlu1 %v1310_v26, %s4466_s21 }
 0x674   :  { %v1234_v27 = vpop.f32.mrf.mxu1  ;;  %v4159_v28 = vpop.f32.mrf.mxu0 }
 0x675   :  { %1620 = vrot.lane.b32.xlu0 %v1234_v27, %s4466_s21  ;;  %v1893_v28 = vld [vmem:[%s5183_s6 + $0x38] sm:$0xff] }
 0x676   :  { %v4154_v29 = vpop.f32.mrf.mxu1  ;;  %4202 = vmatprep.subr.mxu1 %v1893_v28 }
 0x677   :  { %v1892_v29 = vld [vmem:[%s5183_s6 + $0x30] sm:$0xff] }
 0x678   :  { %v1386_v30 = vpop.f32.mrf.mxu1 }
 0x679   :  { %1628 = vrot.lane.b32.xlu0 %v1386_v30, %s4467_s22  ;;  %v1891_v30 = vld [vmem:[%s5183_s6 + $0x28] sm:$0xff] }
 0x67a   :  { %v4164_v31 = vpop.f32.mrf.mxu1  ;;  %v1462_v34 = vpop.f32.mrf.mxu0 }
 0x67b   :  { %1630 = vrot.lane.b32.xlu1 %v1462_v34, %s4467_s22  ;;  %v1890_v31 = vld [vmem:[%s5183_s6 + $0x20] sm:$0xff]  ;;  %v1889_v34 = vld [vmem:[%s5183_s6 + $0x18] sm:$0xff] }
 0x67c   :  { %v4169_v35 = vpop.f32.mrf.mxu0  ;;  %v1538_v36 = vpop.f32.mrf.mxu1 }
 0x67d   :  { %1636 = vrot.lane.b32.xlu0 %v1538_v36, %s4468_s23  ;;  %v1888_v35 = vld [vmem:[%s5183_s6 + $0x10] sm:$0xff]  ;;  %v1887_v36 = vld [vmem:[%s5183_s6 + $0x8] sm:$0xff] }
 0x67e   :  { %v4174_v37 = vpop.f32.mrf.mxu1  ;;  %v1614_v38 = vpop.f32.mrf.mxu0 }
 0x67f   :  { %1638 = vrot.lane.b32.xlu1 %v1614_v38, %s4468_s23  ;;  %v1886_v37 = vld [vmem:[%s5183_s6] sm:$0xff]  ;;  %v3881_v38 = vld [vmem:[%s5179_s1 + $0x17] ss:$0 sm:$0xff] }
 0x680   :  { %v4179_v39 = vpop.f32.mrf.mxu0 }
 0x6e5   :  { %v1623_v41 = vpop.permute.xlu1 %1622 }
 0x6e6   :  { %v1643_v50 = vsel %vm315_vm3, %v1158_v20, %v1623_v41 }
 0x6e7   :  { %v1621_v40 = vpop.permute.xlu0 %1620 }
 0x6e8   :  { %v1642_v44 = vsel %vm315_vm3, %v1082_v18, %v1621_v40 }
 0x6eb   :  { %v1629_v42 = vpop.permute.xlu0 %1628 }
 0x6ec   :  { %v1645_v46 = vsel %vm1644_vm8, %v1642_v44, %v1629_v42 }
 0x6ed   :  { %v1631_v43 = vpop.permute.xlu1 %1630 }
 0x6ee   :  { %v1646_v59 = vsel %vm1644_vm8, %v1643_v50, %v1631_v43 }
 0x6ef   :  { %v1637_v48 = vpop.permute.xlu0 %1636 }
 0x6f0   :  { %v1648_v52 = vsel %vm1647_vm9, %v1645_v46, %v1637_v48 }
 0x6f1   :  { %v1639_v61 = vpop.permute.xlu1 %1638  ;;  %4188 = vmatprep.mubr.msk.f32.mxu1 %vm154_vm1, %v1648_v52 }
 0x6f2   :  { %v1649_v62 = vsel %vm1647_vm9, %v1646_v59, %v1639_v61 }
 0x6f3   :  { %4189 = vmatmul.mubr.msk.f32.vlgmr.msra.gmra.mxu1 %vm154_vm1, %v1649_v62 }
 0x6f4   :  { %4203 = vmatpush3.msra.mxu1 %v1893_v28  ;;  %v3887_v28 = vld [vmem:[%s5179_s1 + $0x19] ss:$0 sm:$0xff] }
 0x6f5   :  { %4204 = vmatprep.subr.mxu1 %v1892_v29 }
 0x6f6   :  { %4205 = vmatpush3.msra.mxu1 %v1892_v29 }
 0x6f7   :  { %4206 = vmatprep.subr.mxu1 %v1891_v30 }
 0x6f8   :  { %4207 = vmatpush3.msra.mxu1 %v1891_v30 }
 0x6f9   :  { %4208 = vmatprep.subr.mxu1 %v1890_v31 }
 0x6fa   :  { %4209 = vmatpush3.msra.mxu1 %v1890_v31 }
 0x6fb   :  { %4210 = vmatprep.subr.mxu1 %v1889_v34 }
 0x6fc   :  { %4211 = vmatpush3.msra.mxu1 %v1889_v34 }
 0x6fd   :  { %4212 = vmatprep.subr.mxu1 %v1888_v35 }
 0x6fe   :  { %4213 = vmatpush3.msra.mxu1 %v1888_v35  ;;  %v3888_v35 = vld [vmem:[%s5179_s1 + $0x1a] ss:$0 sm:$0xff] }
 0x6ff   :  { %4214 = vmatprep.subr.mxu1 %v1887_v36 }
 0x700   :  { %4215 = vmatpush3.msra.mxu1 %v1887_v36 }
 0x701   :  { %4216 = vmatprep.subr.mxu1 %v1886_v37 }
 0x702   :  { %4217 = vmatpush3.msra.mxu1 %v1886_v37 }
 0x703   :  { %4242 = vmatprep.subr.mxu1 %v4457_v49 }
 0x7b3   :  { %v4190_v0 = vpop.f32.mrf.mxu1 }
 0x7b4   :  { %v1736_v1 = vadd.f32 %v4190_v0, %v3876_v63 }
 0x7b5   :  { %v1730_v2 = vpop.f32.mrf.mxu1 }
 0x7b6   :  { %v1731_v3 = vadd.f32 %v3876_v63, %v1730_v2  ;;  %v1740_v57 = vadd.f32 %v1736_v1, %v4573_v47 }
 0x7b8   :  { %v1744_v60 = vsel %vm154_vm1, %v1740_v57, 0.0  ;;  %v1739_v4 = vadd.f32 %v1731_v3, %v4569_v45  ;;  %v1782_v45 = vld [vmem:[%s5182_s5 + $0x18] sm:$0xff] }
 0x7b9   :  { %1745 = vadd.xlane.f32.xlu1 %v1744_v60  ;;  %4191 = vmatprep.subr.mxu0 %v1782_v45 }
 0x7ba   :  { %v1741_v5 = vsel %vm154_vm1, %v1739_v4, 0.0  ;;  %4192 = vmatpush3.msra.mxu0 %v1782_v45 }
 0x7bb   :  { %1742 = vadd.xlane.f32.xlu0 %v1741_v5  ;;  %4193 = vmatprep.subr.mxu0 %v1781_v51 }
 0x7bc   :  { %4194 = vmatpush3.msra.mxu0 %v1781_v51 }
 0x7bd   :  { %4195 = vmatprep.subr.mxu0 %v1780_v15 }
 0x7be   :  { %4196 = vmatpush3.msra.mxu0 %v1780_v15 }
 0x7bf   :  { %4197 = vmatprep.subr.mxu0 %v1779_v53 }
 0x7c0   :  { %4198 = vmatpush3.msra.mxu0 %v1779_v53 }
 0x842   :  { %v1746_v6 = vpop.xlane.xlu1 %1745 }
 0x843   :  { %v1748_v7 = vmul.f32 0.03125, %v1746_v6  ;;  %v3884_v6 = vld [vmem:[%s5179_s1 + $0x18] ss:$0 sm:$0xff] }
 0x844   :  { %v1743_v8 = vpop.xlane.xlu0 %1742 }
 0x845   :  { %v1747_v9 = vmul.f32 0.03125, %v1743_v8  ;;  %v1750_v10 = vsub.f32 %v1740_v57, %v1748_v7 }
 0x847   :  { %v1749_v11 = vsub.f32 %v1739_v4, %v1747_v9  ;;  %v1752_v14 = vmul.f32 %v1750_v10, %v1750_v10 }
 0x849   :  { %v1751_v12 = vmul.f32 %v1749_v11, %v1749_v11  ;;  %v1756_v47 = vsel %vm154_vm1, %v1752_v14, 0.0 }
 0x84b   :  { %v1753_v13 = vsel %vm154_vm1, %v1751_v12, 0.0 }
 0x84c   :  { %1754 = vadd.xlane.f32.xlu0 %v1753_v13 }
 0x850   :  { %1757 = vadd.xlane.f32.xlu0 %v1756_v47 }
 0x8d5   :  { %v1755_v55 = vpop.xlane.xlu0 %1754 }
 0x8d6   :  { %v1759_v56 = vmul.f32 0.03125, %v1755_v55 }
 0x8d8   :  { %v1761_v54 = vadd.f32 1e-12, %v1759_v56 }
 0x8d9   :  { %v1758_v58 = vpop.xlane.xlu0 %1757 }
 0x8da   :  { %4401 = vrsqrt.f32 %v1761_v54  ;;  %v1760_v16 = vmul.f32 0.03125, %v1758_v58 }
 0x8dc   :  { %v1762_v17 = vadd.f32 1e-12, %v1760_v16 }
 0x8de   :  { %4403 = vrsqrt.f32 %v1762_v17  ;;  %v3892_v17 = vld [vmem:[%s5180_s3 + $0x38] sm:$0xff] }
 0x8df   :  { %4221 = vmatprep.subr.mxu0 %v3892_v17 }
 0x8e7   :  { %v4402_v18 = vpop.eup %4401 }
 0x8e8   :  { %v1765_v20 = vmul.f32 %v4402_v18, %v1749_v11  ;;  %v3891_v18 = vld [vmem:[%s5180_s3 + $0x30] sm:$0xff] }
 0x8ea   :  { %v1771_v22 = vmul.f32 %v3879_v19, %v1765_v20  ;;  %v3889_v20 = vld [vmem:[%s5180_s3 + $0x20] sm:$0xff] }
 0x8eb   :  { %v4404_v23 = vpop.eup %4403 }
 0x8ec   :  { %v1766_v24 = vmul.f32 %v4404_v23, %v1750_v10  ;;  %v4821_v25 = vadd.f32 %v3880_v21, %v1771_v22 }
 0x8ee   :  { %v1772_v26 = vmul.f32 %v3879_v19, %v1766_v24  ;;  %4199 = vmatprep.mubr.msk.f32.mxu0 %vm154_vm1, %v4821_v25  ;;  %v3890_v19 = vld [vmem:[%s5180_s3 + $0x28] sm:$0xff] }
 0x8f0   :  { %v1778_v27 = vadd.f32 %v3880_v21, %v1772_v26 }
 0x8f2   :  { %4200 = vmatmul.mubr.msk.f32.vlgmr.msra.gmra.mxu0 %vm154_vm1, %v1778_v27 }
 0x8f3   :  { %4222 = vmatpush3.msra.mxu0 %v3892_v17 }
 0x8f4   :  { %4223 = vmatprep.subr.mxu0 %v3891_v18 }
 0x8f5   :  { %4224 = vmatpush3.msra.mxu0 %v3891_v18 }
 0x8f6   :  { %4225 = vmatprep.subr.mxu0 %v3890_v19 }
 0x8f7   :  { %4226 = vmatpush3.msra.mxu0 %v3890_v19 }
 0x8f8   :  { %4227 = vmatprep.subr.mxu0 %v3889_v20 }
 0x8f9   :  { %4228 = vmatpush3.msra.mxu0 %v3889_v20 }
 0x8fa   :  { %4232 = vmatprep.subr.mxu0 %v4457_v49 }
 0x9b2   :  { %v4201_v39 = vpop.f32.mrf.mxu0 }
 0x9b3   :  { %v1865_v40 = vadd.f32 %v4201_v39, %v3881_v38  ;;  %v3893_v39 = vld [vmem:[%s5179_s1 + $0x1b] ss:$0 sm:$0xff] }
 0x9b4   :  { %v1859_v41 = vpop.f32.mrf.mxu0 }
 0x9b5   :  { %v1871_v42 = vmul.f32 0.044715, %v1865_v40  ;;  %v1860_v43 = vadd.f32 %v3881_v38, %v1859_v41  ;;  %v1869_v60 = vmul.f32 0.5, %v1865_v40 }
 0x9b7   :  { %v1873_v44 = vmul.f32 %v1871_v42, %v1865_v40  ;;  %v1870_v46 = vmul.f32 0.044715, %v1860_v43  ;;  %v1868_v3 = vmul.f32 0.5, %v1860_v43 }
 0x9b9   :  { %v1875_v48 = vmul.f32 %v1873_v44, %v1865_v40  ;;  %v1872_v50 = vmul.f32 %v1870_v46, %v1860_v43 }
 0x9bb   :  { %v1877_v52 = vadd.f32 %v1875_v48, %v1865_v40  ;;  %v1874_v59 = vmul.f32 %v1872_v50, %v1860_v43 }
 0x9bd   :  { %v1879_v61 = vmul.f32 0.7978846, %v1877_v52  ;;  %v1876_v62 = vadd.f32 %v1874_v59, %v1860_v43 }
 0x9bf   :  { %4405 = vtanh.f32 %v1879_v61  ;;  %v1878_v63 = vmul.f32 0.7978846, %v1876_v62 }
 0x9c1   :  { %4407 = vtanh.f32 %v1878_v63 }
 0x9cc   :  { %v4406_v0 = vpop.eup %4405 }
 0x9cd   :  { %v1883_v2 = vadd.f32 1.0, %v4406_v0 }
 0x9ce   :  { %v4408_v1 = vpop.eup %4407 }
 0x9cf   :  { %v1882_v57 = vadd.f32 1.0, %v4408_v1  ;;  %v1885_v5 = vmul.f32 %v1883_v2, %v1869_v60 }
 0x9d1   :  { %v1884_v4 = vmul.f32 %v1882_v57, %v1868_v3 }
 0x9d3   :  { %4218 = vmatprep.mubr.msk.f32.mxu1 %vm1898_vm10, %v1884_v4 }
 0x9d4   :  { %4219 = vmatmul.mubr.msk.f32.vlgmr.msra.gmra.mxu1 %vm1898_vm10, %v1885_v5 }
 0x9d5   :  { %4244 = vmatprep.mubr.msk.f32.mxu1 %vm4458_vm2, %v4457_v49 }
 0xa94   :  { %v4220_v7 = vpop.f32.mrf.mxu1 }
 0xa95   :  { %v1977_v8 = vadd.f32 %v4220_v7, %v3884_v6 }
 0xa96   :  { %v1971_v9 = vpop.f32.mrf.mxu1 }
 0xa97   :  { %v1972_v10 = vadd.f32 %v3884_v6, %v1971_v9  ;;  %v1981_v11 = vadd.f32 %v1977_v8, %v1778_v27 }
 0xa99   :  { %v1985_v12 = vsel %vm154_vm1, %v1981_v11, 0.0  ;;  %v1980_v13 = vadd.f32 %v1972_v10, %v4821_v25 }
 0xa9a   :  { %1986 = vadd.xlane.f32.xlu1 %v1985_v12 }
 0xa9b   :  { %v1982_v14 = vsel %vm154_vm1, %v1980_v13, 0.0 }
 0xa9c   :  { %1983 = vadd.xlane.f32.xlu0 %v1982_v14 }
 0xb23   :  { %v1987_v47 = vpop.xlane.xlu1 %1986 }
 0xb24   :  { %v1989_v45 = vmul.f32 0.03125, %v1987_v47 }
 0xb25   :  { %v1984_v51 = vpop.xlane.xlu0 %1983 }
 0xb26   :  { %v1991_v15 = vsub.f32 %v1981_v11, %v1989_v45  ;;  %v1988_v53 = vmul.f32 0.03125, %v1984_v51 }
 0xb28   :  { %v1990_v55 = vsub.f32 %v1980_v13, %v1988_v53  ;;  %v1993_v56 = vmul.f32 %v1991_v15, %v1991_v15 }
 0xb2a   :  { %v1997_v54 = vsel %vm154_vm1, %v1993_v56, 0.0  ;;  %v1992_v58 = vmul.f32 %v1990_v55, %v1990_v55 }
 0xb2b   :  { %1998 = vadd.xlane.f32.xlu1 %v1997_v54 }
 0xb2c   :  { %v1994_v16 = vsel %vm154_vm1, %v1992_v58, 0.0 }
 0xb2d   :  { %1995 = vadd.xlane.f32.xlu0 %v1994_v16 }
 0xbb4   :  { %v1999_v21 = vpop.xlane.xlu1 %1998 }
 0xbb5   :  { %v2001_v22 = vmul.f32 0.03125, %v1999_v21 }
 0xbb6   :  { %v1996_v23 = vpop.xlane.xlu0 %1995 }
 0xbb7   :  { %v2003_v24 = vadd.f32 1e-12, %v2001_v22  ;;  %v2000_v25 = vmul.f32 0.03125, %v1996_v23 }
 0xbb9   :  { %4409 = vrsqrt.f32 %v2003_v24  ;;  %v2002_v26 = vadd.f32 1e-12, %v2000_v25 }
 0xbbb   :  { %4411 = vrsqrt.f32 %v2002_v26 }
 0xbc6   :  { %v4410_v27 = vpop.eup %4409 }
 0xbc7   :  { %v2007_v29 = vmul.f32 %v4410_v27, %v1991_v15 }
 0xbc8   :  { %v4412_v30 = vpop.eup %4411 }
 0xbc9   :  { %v2006_v31 = vmul.f32 %v4412_v30, %v1990_v55  ;;  %v2013_v34 = vmul.f32 %v3887_v28, %v2007_v29 }
 0xbcb   :  { %v2012_v36 = vmul.f32 %v3887_v28, %v2006_v31  ;;  %v4887_v38 = vadd.f32 %v3888_v35, %v2013_v34 }
 0xbcd   :  { %v4885_v37 = vadd.f32 %v3888_v35, %v2012_v36 }
 0xbcf   :  { %4229 = vmatprep.mubr.msk.f32.mxu0 %vm154_vm1, %v4885_v37 }
 0xbd0   :  { %4230 = vmatmul.mubr.msk.f32.vlgmr.msra.gmra.mxu0 %vm154_vm1, %v4887_v38 }
 0xbd1   :  { %4234 = vmatprep.mubr.msk.f32.mxu0 %vm4458_vm2, %v4457_v49 }
 0xc90   :  { %v4231_v40 = vpop.f32.mrf.mxu0 }
 0xc91   :  { %v4898_v41 = vadd.f32 %v4231_v40, %v3893_v39 }
 0xc92   :  { %v2109_v42 = vpop.f32.mrf.mxu0 }
 0xc93   :  { %v4900_v43 = vadd.f32 %v3893_v39, %v2109_v42  ;;  %2122 = vrot.lane.b32.xlu1 %v4898_v41, %s4459_s10 }
 0xc95   :  { %2120 = vrot.lane.b32.xlu0 %v4900_v43, %s4459_s10 }
 0xc97   :  { %2124 = vrot.lane.b32.xlu1 %v4900_v43, %s4460_s11 }
 0xc99   :  { %2128 = vrot.lane.b32.xlu0 %v4900_v43, %s4461_s12 }
 0xc9b   :  { %2126 = vrot.lane.b32.xlu1 %v4898_v41, %s4460_s11 }
 0xc9d   :  { %2132 = vrot.lane.b32.xlu0 %v4900_v43, %s4462_s13 }
 0xc9f   :  { %2130 = vrot.lane.b32.xlu1 %v4898_v41, %s4461_s12 }
 0xca3   :  { %2208 = vrot.lane.b32.xlu1 %v4898_v41, %s4462_s13 }
 0xd05   :  { %v4918_v44 = vpop.permute.xlu1 %2122 }
 0xd06   :  { %2360 = vrot.lane.b32.xlu1 %v4918_v44, %s4462_s13 }
 0xd07   :  { %v4922_v46 = vpop.permute.xlu0 %2120 }
 0xd08   :  { %2284 = vrot.lane.b32.xlu0 %v4922_v46, %s4462_s13 }
 0xd09   :  { %v4926_v48 = vpop.permute.xlu1 %2124 }
 0xd0b   :  { %v4928_v50 = vpop.permute.xlu0 %2128 }
 0xd0c   :  { %2436 = vrot.lane.b32.xlu0 %v4926_v48, %s4462_s13 }
 0xd0d   :  { %v4932_v52 = vpop.permute.xlu1 %2126 }
 0xd0e   :  { %2512 = vrot.lane.b32.xlu1 %v4932_v52, %s4462_s13 }
 0xd0f   :  { %v2133_v59 = vpop.permute.xlu0 %2132 }
 0xd10   :  { %2588 = vrot.lane.b32.xlu0 %v4928_v50, %s4462_s13  ;;  %4233 = vmatpush3.xpose.msk.msra.mxu0 %vm315_vm3, %v2133_v59 }
 0xd11   :  { %v4939_v61 = vpop.permute.xlu1 %2130  ;;  %4237 = vmatprep.subr.mxu0 %v4457_v49 }
 0xd12   :  { %2664 = vrot.lane.b32.xlu1 %v4939_v61, %s4462_s13 }
 0xd13   :  { %4235 = vmatmul.mubr.msk.f32.vlgmr.msra.gmra.mxu0 %vm315_vm3, %v4900_v43 }
 0xd14   :  { %4239 = vmatprep.mubr.msk.f32.mxu0 %vm4458_vm2, %v4457_v49 }
 0xd15   :  { %v2209_v62 = vpop.permute.xlu1 %2208 }
 0xd16   :  { %4238 = vmatpush3.xpose.msk.msra.mxu0 %vm315_vm3, %v2209_v62 }
 0xd17   :  { %4247 = vmatprep.subr.mxu0 %v4457_v49 }
 0xd19   :  { %4240 = vmatmul.mubr.msk.f32.vlgmr.msra.gmra.mxu0 %vm315_vm3, %v4898_v41 }
 0xd1a   :  { %4249 = vmatprep.mubr.msk.f32.mxu0 %vm4458_vm2, %v4457_v49 }
 0xd78   :  { %v2361_v63 = vpop.permute.xlu1 %2360 }
 0xd79   :  { %4248 = vmatpush3.xpose.msk.msra.mxu0 %vm315_vm3, %v2361_v63 }
 0xd7a   :  { %v2285_v0 = vpop.permute.xlu0 %2284  ;;  %4257 = vmatprep.subr.mxu0 %v4457_v49 }
 0xd7b   :  { %4243 = vmatpush3.xpose.msk.msra.mxu1 %vm315_vm3, %v2285_v0 }
 0xd7c   :  { %4250 = vmatmul.mubr.msk.f32.vlgmr.msra.gmra.mxu0 %vm315_vm3, %v4918_v44  ;;  %4252 = vmatprep.subr.mxu1 %v4457_v49 }
 0xd7d   :  { %4259 = vmatprep.mubr.msk.f32.mxu0 %vm4458_vm2, %v4457_v49 }
 0xd7e   :  { %4245 = vmatmul.mubr.msk.f32.vlgmr.msra.gmra.mxu1 %vm315_vm3, %v4922_v46  ;;  %v2437_v1 = vpop.permute.xlu0 %2436 }
 0xd7f   :  { %4253 = vmatpush3.xpose.msk.msra.mxu1 %vm315_vm3, %v2437_v1  ;;  %4254 = vmatprep.mubr.msk.f32.mxu1 %vm4458_vm2, %v4457_v49 }
 0xd80   :  { %v2513_v2 = vpop.permute.xlu1 %2512  ;;  %4262 = vmatprep.subr.mxu1 %v4457_v49 }
 0xd81   :  { %4258 = vmatpush3.xpose.msk.msra.mxu0 %vm315_vm3, %v2513_v2 }
 0xd82   :  { %4255 = vmatmul.mubr.msk.f32.vlgmr.msra.gmra.mxu1 %vm315_vm3, %v4926_v48  ;;  %v2589_v3 = vpop.permute.xlu0 %2588  ;;  %4267 = vmatprep.subr.mxu0 %v4457_v49 }
 0xd83   :  { %4263 = vmatpush3.xpose.msk.msra.mxu1 %vm315_vm3, %v2589_v3  ;;  %4264 = vmatprep.mubr.msk.f32.mxu1 %vm4458_vm2, %v4457_v49 }
 0xd84   :  { %v2665_v57 = vpop.permute.xlu1 %2664  ;;  %4260 = vmatmul.mubr.msk.f32.vlgmr.msra.gmra.mxu0 %vm315_vm3, %v4932_v52  ;;  %4272 = vmatprep.subr.mxu1 %v4457_v49 }
 0xd85   :  { %4268 = vmatpush3.xpose.msk.msra.mxu0 %vm315_vm3, %v2665_v57  ;;  %4269 = vmatprep.mubr.msk.f32.mxu0 %vm4458_vm2, %v4457_v49 }
 0xd86   :  { %4265 = vmatmul.mubr.msk.f32.vlgmr.msra.gmra.mxu1 %vm315_vm3, %v4928_v50  ;;  %4277 = vmatprep.subr.mxu0 %v4457_v49 }
 0xd87   :  { %4274 = vmatprep.mubr.msk.f32.mxu1 %vm4458_vm2, %v4457_v49 }
 0xd88   :  { %4270 = vmatmul.mubr.msk.f32.vlgmr.msra.gmra.mxu0 %vm315_vm3, %v4939_v61 }
 0xd89   :  { %4279 = vmatprep.mubr.msk.f32.mxu0 %vm4458_vm2, %v4457_v49 }
 0xdd3   :  { %v2204_v60 = vpop.f32.mrf.mxu0 }
 0xdd4   :  { %v2205_v4 = vadd.f32 %v2204_v60, %v4684_v33 }
 0xdd5   :  { %v4236_v5 = vpop.f32.mrf.mxu0 }
 0xdd6   :  { %v2740_v6 = vsel %vm315_vm3, %v2205_v4, -inf }
 0xdd7   :  { %2741 = vmax.xlane.f32.xlu0 %v2740_v6 }
 0xdd9   :  { %v2280_v7 = vpop.f32.mrf.mxu0 }
 0xdda   :  { %v2281_v8 = vadd.f32 %v2280_v7, %v4682_v32 }
 0xddb   :  { %v4241_v9 = vpop.f32.mrf.mxu0 }
 0xddc   :  { %v2743_v10 = vsel %vm315_vm3, %v2281_v8, -inf }
 0xddd   :  { %2744 = vmax.xlane.f32.xlu1 %v2743_v10 }
 0xe3c   :  { %v2432_v11 = vpop.f32.mrf.mxu0 }
 0xe3d   :  { %v2433_v12 = vadd.f32 %v2432_v11, %v4682_v32 }
 0xe3e   :  { %v2356_v13 = vpop.f32.mrf.mxu1  ;;  %v4251_v14 = vpop.f32.mrf.mxu0 }
 0xe3f   :  { %v2357_v47 = vadd.f32 %v2356_v13, %v4684_v33  ;;  %v2749_v45 = vsel %vm315_vm3, %v2433_v12, -inf }
 0xe40   :  { %2750 = vmax.xlane.f32.xlu0 %v2749_v45  ;;  %v4246_v51 = vpop.f32.mrf.mxu1 }
 0xe41   :  { %v2746_v55 = vsel %vm315_vm3, %v2357_v47, -inf }
 0xe42   :  { %v2508_v15 = vpop.f32.mrf.mxu1 }
 0xe43   :  { %v2509_v53 = vadd.f32 %v2508_v15, %v4684_v33 }
 0xe44   :  { %v2584_v56 = vpop.f32.mrf.mxu0  ;;  %2747 = vmax.xlane.f32.xlu0 %v2746_v55  ;;  %v4256_v54 = vpop.f32.mrf.mxu1 }
 0xe45   :  { %v2585_v58 = vadd.f32 %v2584_v56, %v4682_v32  ;;  %v2752_v20 = vsel %vm315_vm3, %v2509_v53, -inf }
 0xe46   :  { %v4261_v16 = vpop.f32.mrf.mxu0  ;;  %v2660_v17 = vpop.f32.mrf.mxu1 }
 0xe47   :  { %v2661_v18 = vadd.f32 %v2660_v17, %v4684_v33  ;;  %v2755_v19 = vsel %vm315_vm3, %v2585_v58, -inf }
 0xe48   :  { %2756 = vmax.xlane.f32.xlu1 %v2755_v19  ;;  %v2736_v21 = vpop.f32.mrf.mxu0  ;;  %2753 = vmax.xlane.f32.xlu0 %v2752_v20  ;;  %v4266_v22 = vpop.f32.mrf.mxu1 }
 0xe49   :  { %v2737_v23 = vadd.f32 %v2736_v21, %v4682_v32  ;;  %v2758_v26 = vsel %vm315_vm3, %v2661_v18, -inf }
 0xe4a   :  { %v4271_v24 = vpop.f32.mrf.mxu0 }
 0xe4b   :  { %v2761_v25 = vsel %vm315_vm3, %v2737_v23, -inf }
 0xe4c   :  { %2762 = vmax.xlane.f32.xlu1 %v2761_v25  ;;  %2759 = vmax.xlane.f32.xlu0 %v2758_v26 }
 0xe5d   :  { %2904 = vrot.lane.b32.xlu1 %v4898_v41, %s4465_s14 }
 0xe60   :  { %v2742_v32 = vpop.xlane.xlu0 %2741 }
 0xe61   :  { %2980 = vrot.lane.b32.xlu1 %v4922_v46, %s4465_s14  ;;  %v2764_v33 = vsub.f32 %v2205_v4, %v2742_v32 }
 0xe62   :  { %2828 = vrot.lane.b32.xlu0 %v4900_v43, %s4465_s14 }
 0xe63   :  { %v2772_v27 = vmul.f32 1.442695, %v2764_v33 }
 0xe65   :  { %3056 = vrot.lane.b32.xlu1 %v4918_v44, %s4465_s14  ;;  %4413 = vpow2.f32 %v2772_v27 }
 0xe66   :  { %3132 = vrot.lane.b32.xlu0 %v4926_v48, %s4465_s14  ;;  %v2745_v28 = vpop.xlane.xlu1 %2744 }
 0xe67   :  { %v2765_v29 = vsub.f32 %v2281_v8, %v2745_v28 }
 0xe69   :  { %3208 = vrot.lane.b32.xlu1 %v4932_v52, %s4465_s14  ;;  %v2774_v30 = vmul.f32 1.442695, %v2765_v29 }
 0xe6b   :  { %4415 = vpow2.f32 %v2774_v30 }
 0xe72   :  { %v5018_v31 = vpop.eup %4413 }
 0xe73   :  { %v2788_v34 = vsel %vm315_vm3, %v5018_v31, 0.0 }
 0xe78   :  { %v5022_v35 = vpop.eup %4415 }
 0xe79   :  { %v2791_v36 = vsel %vm315_vm3, %v5022_v35, 0.0 }
 0xe85   :  { %2789 = vadd.xlane.f32.xlu0 %v2788_v34 }
 0xe8d   :  { %2792 = vadd.xlane.f32.xlu1 %v2791_v36 }
 0xec9   :  { %v2751_v39 = vpop.xlane.xlu0 %2750 }
 0xeca   :  { %v2767_v40 = vsub.f32 %v2433_v12, %v2751_v39 }
 0xecc   :  { %v2778_v41 = vmul.f32 1.442695, %v2767_v40 }
 0xecd   :  { %v2748_v42 = vpop.xlane.xlu0 %2747 }
 0xece   :  { %4417 = vpow2.f32 %v2778_v41  ;;  %v2766_v43 = vsub.f32 %v2357_v47, %v2748_v42 }
 0xed0   :  { %v2776_v44 = vmul.f32 1.442695, %v2766_v43 }
 0xed1   :  { %v2757_v46 = vpop.xlane.xlu1 %2756  ;;  %v2754_v48 = vpop.xlane.xlu0 %2753 }
 0xed2   :  { %4419 = vpow2.f32 %v2776_v44  ;;  %v2769_v52 = vsub.f32 %v2585_v58, %v2757_v46  ;;  %v2768_v59 = vsub.f32 %v2509_v53, %v2754_v48  ;;  %v3923_v44 = vld [vmem:[%s5181_s4 + $0x38] sm:$0xff]  ;;  %v3921_v46 = vld [vmem:[%s5181_s4 + $0x28] sm:$0xff] }
 0xed4   :  { %v2782_v62 = vmul.f32 1.442695, %v2769_v52  ;;  %v2780_v63 = vmul.f32 1.442695, %v2768_v59  ;;  %v3920_v52 = vld [vmem:[%s5181_s4 + $0x20] sm:$0xff] }
 0xed5   :  { %v2763_v0 = vpop.xlane.xlu1 %2762  ;;  %v2760_v1 = vpop.xlane.xlu0 %2759 }
 0xed6   :  { %4421 = vpow2.f32 %v2782_v62  ;;  %v2771_v2 = vsub.f32 %v2737_v23, %v2763_v0  ;;  %v2770_v3 = vsub.f32 %v2661_v18, %v2760_v1 }
 0xed7   :  { %4423 = vpow2.f32 %v2780_v63 }
 0xed8   :  { %v2786_v57 = vmul.f32 1.442695, %v2771_v2  ;;  %v2784_v60 = vmul.f32 1.442695, %v2770_v3 }
 0xed9   :  { %v2905_v4 = vpop.permute.xlu1 %2904  ;;  %v2829_v5 = vpop.permute.xlu0 %2828 }
 0xeda   :  { %4425 = vpow2.f32 %v2786_v57  ;;  %4273 = vmatpush3.msra.mxu1 %v2829_v5  ;;  %4278 = vmatpush3.msra.mxu0 %v2905_v4 }
 0xedb   :  { %v4418_v6 = vpop.eup %4417  ;;  %4427 = vpow2.f32 %v2784_v60  ;;  %4282 = vmatprep.subr.mxu1 %v4457_v49  ;;  %4287 = vmatprep.subr.mxu0 %v4457_v49 }
 0xedc   :  { %v2797_v7 = vsel %vm315_vm3, %v4418_v6, 0.0 }
 0xedd   :  { %2798 = vadd.xlane.f32.xlu1 %v2797_v7  ;;  %v2981_v15 = vpop.permute.xlu1 %2980  ;;  %v3133_v53 = vpop.permute.xlu0 %3132 }
 0xedf   :  { %v4420_v8 = vpop.eup %4419 }
 0xee0   :  { %v2794_v9 = vsel %vm315_vm3, %v4420_v8, 0.0 }
 0xee1   :  { %2795 = vadd.xlane.f32.xlu0 %v2794_v9  ;;  %v3057_v55 = vpop.permute.xlu1 %3056 }
 0xee3   :  { %v4422_v10 = vpop.eup %4421 }
 0xee4   :  { %v4424_v11 = vpop.eup %4423  ;;  %v2803_v12 = vsel %vm315_vm3, %v4422_v10, 0.0 }
 0xee5   :  { %2804 = vadd.xlane.f32.xlu1 %v2803_v12  ;;  %v2800_v13 = vsel %vm315_vm3, %v4424_v11, 0.0  ;;  %v3209_v54 = vpop.permute.xlu1 %3208 }
 0xee6   :  { %2801 = vadd.xlane.f32.xlu0 %v2800_v13 }
 0xee7   :  { %v5032_v14 = vpop.eup %4425 }
 0xee8   :  { %v5034_v47 = vpop.eup %4427  ;;  %v2809_v45 = vsel %vm315_vm3, %v5032_v14, 0.0 }
 0xee9   :  { %2810 = vadd.xlane.f32.xlu1 %v2809_v45  ;;  %v2806_v51 = vsel %vm315_vm3, %v5034_v47, 0.0 }
 0xeea   :  { %2807 = vadd.xlane.f32.xlu0 %v2806_v51 }
 0xefa   :  { %3360 = vrot.lane.b32.xlu1 %v4939_v61, %s4465_s14 }
 0xf00   :  { %3284 = vrot.lane.b32.xlu0 %v4928_v50, %s4465_s14 }
 0xf0e   :  { %v2790_v56 = vpop.xlane.xlu0 %2789 }
 0xf0f   :  { %4429 = vrcp.f32 %v2790_v56 }
 0xf16   :  { %v2793_v58 = vpop.xlane.xlu1 %2792 }
 0xf17   :  { %4431 = vrcp.f32 %v2793_v58 }
 0xf1c   :  { %v4430_v16 = vpop.eup %4429 }
 0xf1d   :  { %v2820_v17 = vmul.f32 %v4430_v16, %v5018_v31 }
 0xf1f   :  { %4275 = vmatmul.mubr.msk.f32.vlgmr.msra.gmra.mxu1 %vm315_vm3, %v2820_v17 }
 0xf20   :  { %4283 = vmatpush3.msra.mxu1 %v2981_v15  ;;  %4284 = vmatprep.mubr.msk.f32.mxu1 %vm4458_vm2, %v4457_v49  ;;  %v3924_v15 = vld [vmem:[%s5179_s1 + $0x1c] ss:$0 sm:$0xff] }
 0xf21   :  { %4292 = vmatprep.subr.mxu1 %v4457_v49 }
 0xf24   :  { %v4432_v50 = vpop.eup %4431 }
 0xf25   :  { %v2821_v61 = vmul.f32 %v4432_v50, %v5022_v35 }
 0xf27   :  { %4280 = vmatmul.mubr.msk.f32.vlgmr.msra.gmra.mxu0 %vm315_vm3, %v2821_v61 }
 0xf28   :  { %4288 = vmatpush3.msra.mxu0 %v3057_v55  ;;  %4289 = vmatprep.mubr.msk.f32.mxu0 %vm4458_vm2, %v4457_v49 }
 0xf29   :  { %4297 = vmatprep.subr.mxu0 %v4457_v49 }
 0xf66   :  { %v2799_v18 = vpop.xlane.xlu1 %2798 }
 0xf67   :  { %4433 = vrcp.f32 %v2799_v18 }
 0xf6a   :  { %v2796_v19 = vpop.xlane.xlu0 %2795 }
 0xf6b   :  { %4435 = vrcp.f32 %v2796_v19 }
 0xf6e   :  { %v2805_v20 = vpop.xlane.xlu1 %2804 }
 0xf6f   :  { %4437 = vrcp.f32 %v2805_v20  ;;  %v2802_v21 = vpop.xlane.xlu0 %2801 }
 0xf70   :  { %4439 = vrcp.f32 %v2802_v21 }
 0xf72   :  { %v2811_v22 = vpop.xlane.xlu1 %2810 }
 0xf73   :  { %4441 = vrcp.f32 %v2811_v22  ;;  %v2808_v23 = vpop.xlane.xlu0 %2807 }
 0xf74   :  { %v4434_v24 = vpop.eup %4433  ;;  %4443 = vrcp.f32 %v2808_v23 }
 0xf75   :  { %v2823_v25 = vmul.f32 %v4434_v24, %v4418_v6 }
 0xf76   :  { %v3361_v30 = vpop.permute.xlu1 %3360 }
 0xf77   :  { %4290 = vmatmul.mubr.msk.f32.vlgmr.msra.gmra.mxu0 %vm315_vm3, %v2823_v25  ;;  %v3285_v34 = vpop.permute.xlu0 %3284 }
 0xf78   :  { %v4436_v26 = vpop.eup %4435  ;;  %4298 = vmatpush3.msra.mxu0 %v3209_v54  ;;  %4299 = vmatprep.mubr.msk.f32.mxu0 %vm4458_vm2, %v4457_v49 }
 0xf79   :  { %v2822_v32 = vmul.f32 %v4436_v26, %v4420_v8  ;;  %4307 = vmatprep.subr.mxu0 %v4457_v49  ;;  %v3931_v26 = vld [vmem:[%s5182_s5 + $0x30] sm:$0xff] }
 0xf7b   :  { %4285 = vmatmul.mubr.msk.f32.vlgmr.msra.gmra.mxu1 %vm315_vm3, %v2822_v32  ;;  %v3930_v32 = vld [vmem:[%s5182_s5 + $0x28] sm:$0xff] }
 0xf7c   :  { %v4438_v33 = vpop.eup %4437  ;;  %4293 = vmatpush3.msra.mxu1 %v3133_v53  ;;  %4294 = vmatprep.mubr.msk.f32.mxu1 %vm4458_vm2, %v4457_v49 }
 0xf7d   :  { %v4440_v27 = vpop.eup %4439  ;;  %4302 = vmatprep.subr.mxu1 %v4457_v49  ;;  %v2825_v28 = vmul.f32 %v4438_v33, %v4422_v10  ;;  %v3929_v33 = vld [vmem:[%s5182_s5 + $0x20] sm:$0xff] }
 0xf7e   :  { %v2824_v29 = vmul.f32 %v4440_v27, %v4424_v11 }
 0xf7f   :  { %4300 = vmatmul.mubr.msk.f32.vlgmr.msra.gmra.mxu0 %vm315_vm3, %v2825_v28 }
 0xf80   :  { %v4442_v31 = vpop.eup %4441  ;;  %4295 = vmatmul.mubr.msk.f32.vlgmr.msra.gmra.mxu1 %vm315_vm3, %v2824_v29  ;;  %4308 = vmatpush3.msra.mxu0 %v3361_v30 }
 0xf81   :  { %v4444_v35 = vpop.eup %4443  ;;  %4303 = vmatpush3.msra.mxu1 %v3285_v34  ;;  %4304 = vmatprep.mubr.msk.f32.mxu1 %vm4458_vm2, %v4457_v49  ;;  %v2827_v36 = vmul.f32 %v4442_v31, %v5032_v14 }
 0xf82   :  { %4309 = vmatprep.mubr.msk.f32.mxu0 %vm4458_vm2, %v4457_v49  ;;  %v2826_v39 = vmul.f32 %v4444_v35, %v5034_v47  ;;  %4312 = vmatprep.subr.mxu1 %v3923_v44  ;;  %v3922_v49 = vld [vmem:[%s5181_s4 + $0x30] sm:$0xff] }
 0xf83   :  { %4310 = vmatmul.mubr.msk.f32.vlgmr.msra.gmra.mxu0 %vm315_vm3, %v2827_v36  ;;  %v3927_v36 = vld [vmem:[%s5179_s1 + $0x1d] ss:$0 sm:$0xff] }
 0xf84   :  { %4305 = vmatmul.mubr.msk.f32.vlgmr.msra.gmra.mxu1 %vm315_vm3, %v2826_v39 }
 0xf85   :  { %4313 = vmatpush3.msra.mxu1 %v3923_v44 }
 0xf86   :  { %4314 = vmatprep.subr.mxu1 %v3922_v49 }
 0xf87   :  { %4315 = vmatpush3.msra.mxu1 %v3922_v49 }
 0xf88   :  { %4316 = vmatprep.subr.mxu1 %v3921_v46 }
 0xf89   :  { %4317 = vmatpush3.msra.mxu1 %v3921_v46 }
 0xf8a   :  { %4318 = vmatprep.subr.mxu1 %v3920_v52 }
 0xf8b   :  { %4319 = vmatpush3.msra.mxu1 %v3920_v52  ;;  %v3942_v52 = vld [vmem:[%s5183_s6 + $0x70] sm:$0xff] }
 0xfdf   :  { %v2900_v40 = vpop.f32.mrf.mxu1 }
 0xfe1   :  { %v4276_v41 = vpop.f32.mrf.mxu1 }
 0xfe7   :  { %v2976_v42 = vpop.f32.mrf.mxu0 }
 0xfe9   :  { %v4281_v43 = vpop.f32.mrf.mxu0 }
0x1037   :  { %v3128_v48 = vpop.f32.mrf.mxu0 }
0x1038   :  { %3440 = vrot.lane.b32.xlu1 %v3128_v48, %s4466_s21  ;;  %v3943_v48 = vld [vmem:[%s5183_s6 + $0x78] sm:$0xff] }
0x1039   :  { %v4291_v59 = vpop.f32.mrf.mxu0  ;;  %4334 = vmatprep.subr.mxu1 %v3943_v48 }
0x103a   :  { %v3941_v59 = vld [vmem:[%s5183_s6 + $0x68] sm:$0xff] }
0x103b   :  { %v3052_v62 = vpop.f32.mrf.mxu1 }
0x103c   :  { %3438 = vrot.lane.b32.xlu0 %v3052_v62, %s4466_s21  ;;  %v3940_v62 = vld [vmem:[%s5183_s6 + $0x60] sm:$0xff] }
0x103d   :  { %v4286_v63 = vpop.f32.mrf.mxu1 }
0x103e   :  { %v3939_v63 = vld [vmem:[%s5183_s6 + $0x58] sm:$0xff] }
0x103f   :  { %v3280_v0 = vpop.f32.mrf.mxu0 }
0x1040   :  { %v3204_v1 = vpop.f32.mrf.mxu1  ;;  %3448 = vrot.lane.b32.xlu1 %v3280_v0, %s4467_s22  ;;  %v3938_v0 = vld [vmem:[%s5183_s6 + $0x50] sm:$0xff] }
0x1041   :  { %3446 = vrot.lane.b32.xlu0 %v3204_v1, %s4467_s22  ;;  %v4301_v2 = vpop.f32.mrf.mxu0  ;;  %v3937_v1 = vld [vmem:[%s5183_s6 + $0x48] sm:$0xff] }
0x1042   :  { %v4296_v3 = vpop.f32.mrf.mxu1  ;;  %v3936_v2 = vld [vmem:[%s5183_s6 + $0x40] sm:$0xff] }
0x1043   :  { %v3432_v57 = vpop.f32.mrf.mxu0  ;;  %v3933_v3 = vld [vmem:[%s5179_s1 + $0x1f] ss:$0 sm:$0xff] }
0x1044   :  { %v3356_v60 = vpop.f32.mrf.mxu1  ;;  %3456 = vrot.lane.b32.xlu1 %v3432_v57, %s4468_s23 }
0x1045   :  { %3454 = vrot.lane.b32.xlu0 %v3356_v60, %s4468_s23  ;;  %v4311_v4 = vpop.f32.mrf.mxu0 }
0x1046   :  { %v4306_v5 = vpop.f32.mrf.mxu1 }
0x10aa   :  { %v3441_v6 = vpop.permute.xlu1 %3440 }
0x10ab   :  { %v3461_v10 = vsel %vm315_vm3, %v2976_v42, %v3441_v6 }
0x10ae   :  { %v3439_v7 = vpop.permute.xlu0 %3438 }
0x10af   :  { %v3460_v11 = vsel %vm315_vm3, %v2900_v40, %v3439_v7  ;;  %v3928_v40 = vld [vmem:[%s5179_s1 + $0x1e] ss:$0 sm:$0xff] }
0x10b2   :  { %v3449_v8 = vpop.permute.xlu1 %3448 }
0x10b3   :  { %v3447_v9 = vpop.permute.xlu0 %3446  ;;  %v3463_v12 = vsel %vm1644_vm8, %v3461_v10, %v3449_v8 }
0x10b4   :  { %v3462_v14 = vsel %vm1644_vm8, %v3460_v11, %v3447_v9 }
0x10b6   :  { %v3457_v13 = vpop.permute.xlu1 %3456 }
0x10b7   :  { %v3465_v47 = vsel %vm1647_vm9, %v3463_v12, %v3457_v13  ;;  %v3455_v45 = vpop.permute.xlu0 %3454 }
0x10b8   :  { %v3464_v51 = vsel %vm1647_vm9, %v3462_v14, %v3455_v45 }
0x10b9   :  { %4320 = vmatprep.mubr.msk.f32.mxu1 %vm154_vm1, %v3464_v51 }
0x10ba   :  { %4321 = vmatmul.mubr.msk.f32.vlgmr.msra.gmra.mxu1 %vm154_vm1, %v3465_v47 }
0x10bb   :  { %4335 = vmatpush3.msra.mxu1 %v3943_v48 }
0x10bc   :  { %4336 = vmatprep.subr.mxu1 %v3942_v52 }
0x10bd   :  { %4337 = vmatpush3.msra.mxu1 %v3942_v52 }
0x10be   :  { %4338 = vmatprep.subr.mxu1 %v3941_v59 }
0x10bf   :  { %4339 = vmatpush3.msra.mxu1 %v3941_v59 }
0x10c0   :  { %4340 = vmatprep.subr.mxu1 %v3940_v62 }
0x10c1   :  { %4341 = vmatpush3.msra.mxu1 %v3940_v62 }
0x10c2   :  { %4342 = vmatprep.subr.mxu1 %v3939_v63 }
0x10c3   :  { %4343 = vmatpush3.msra.mxu1 %v3939_v63 }
0x10c4   :  { %4344 = vmatprep.subr.mxu1 %v3938_v0 }
0x10c5   :  { %4345 = vmatpush3.msra.mxu1 %v3938_v0 }
0x10c6   :  { %4346 = vmatprep.subr.mxu1 %v3937_v1 }
0x10c7   :  { %4347 = vmatpush3.msra.mxu1 %v3937_v1 }
0x10c8   :  { %4348 = vmatprep.subr.mxu1 %v3936_v2 }
0x10c9   :  { %4349 = vmatpush3.msra.mxu1 %v3936_v2 }
0x117a   :  { %v4322_v53 = vpop.f32.mrf.mxu1 }
0x117b   :  { %v3553_v55 = vadd.f32 %v4322_v53, %v3924_v15 }
0x117c   :  { %v3547_v56 = vpop.f32.mrf.mxu1 }
0x117d   :  { %v3557_v54 = vadd.f32 %v3553_v55, %v4887_v38  ;;  %v3548_v58 = vadd.f32 %v3924_v15, %v3547_v56 }
0x117f   :  { %v3556_v16 = vadd.f32 %v3548_v58, %v4885_v37  ;;  %v3561_v17 = vsel %vm154_vm1, %v3557_v54, 0.0  ;;  %v3932_v37 = vld [vmem:[%s5182_s5 + $0x38] sm:$0xff] }
0x1180   :  { %3562 = vadd.xlane.f32.xlu1 %v3561_v17  ;;  %4323 = vmatprep.subr.mxu0 %v3932_v37 }
0x1181   :  { %v3558_v50 = vsel %vm154_vm1, %v3556_v16, 0.0  ;;  %4324 = vmatpush3.msra.mxu0 %v3932_v37 }
0x1182   :  { %3559 = vadd.xlane.f32.xlu0 %v3558_v50  ;;  %4325 = vmatprep.subr.mxu0 %v3931_v26 }
0x1183   :  { %4326 = vmatpush3.msra.mxu0 %v3931_v26 }
0x1184   :  { %4327 = vmatprep.subr.mxu0 %v3930_v32 }
0x1185   :  { %4328 = vmatpush3.msra.mxu0 %v3930_v32 }
0x1186   :  { %4329 = vmatprep.subr.mxu0 %v3929_v33 }
0x1187   :  { %4330 = vmatpush3.msra.mxu0 %v3929_v33 }
0x1209   :  { %v3563_v61 = vpop.xlane.xlu1 %3562 }
0x120a   :  { %v3565_v18 = vmul.f32 0.03125, %v3563_v61 }
0x120b   :  { %v3560_v19 = vpop.xlane.xlu0 %3559 }
0x120c   :  { %v3564_v20 = vmul.f32 0.03125, %v3560_v19  ;;  %v3567_v21 = vsub.f32 %v3557_v54, %v3565_v18 }
0x120e   :  { %v3566_v22 = vsub.f32 %v3556_v16, %v3564_v20  ;;  %v3569_v25 = vmul.f32 %v3567_v21, %v3567_v21  ;;  %v3944_v16 = vld [vmem:[%s5179_s1 + $0x20] ss:$0 sm:$0xff] }
0x1210   :  { %v3568_v23 = vmul.f32 %v3566_v22, %v3566_v22  ;;  %v3573_v38 = vsel %vm154_vm1, %v3569_v25, 0.0 }
0x1212   :  { %v3570_v24 = vsel %vm154_vm1, %v3568_v23, 0.0 }
0x1213   :  { %3571 = vadd.xlane.f32.xlu0 %v3570_v24 }
0x1217   :  { %3574 = vadd.xlane.f32.xlu0 %v3573_v38 }
0x129c   :  { %v3572_v27 = vpop.xlane.xlu0 %3571 }
0x129d   :  { %v3576_v28 = vmul.f32 0.03125, %v3572_v27 }
0x129f   :  { %v3578_v29 = vadd.f32 1e-12, %v3576_v28 }
0x12a0   :  { %v3575_v30 = vpop.xlane.xlu0 %3574 }
0x12a1   :  { %4445 = vrsqrt.f32 %v3578_v29  ;;  %v3577_v31 = vmul.f32 0.03125, %v3575_v30 }
0x12a3   :  { %v3579_v34 = vadd.f32 1e-12, %v3577_v31 }
0x12a5   :  { %4447 = vrsqrt.f32 %v3579_v34 }
0x12ae   :  { %v4446_v35 = vpop.eup %4445 }
0x12af   :  { %v3582_v39 = vmul.f32 %v4446_v35, %v3566_v22 }
0x12b1   :  { %v3588_v41 = vmul.f32 %v3927_v36, %v3582_v39 }
0x12b2   :  { %v4448_v42 = vpop.eup %4447 }
0x12b3   :  { %v3583_v43 = vmul.f32 %v4448_v42, %v3567_v21  ;;  %v3594_v44 = vadd.f32 %v3928_v40, %v3588_v41 }
0x12b5   :  { %v3589_v49 = vmul.f32 %v3927_v36, %v3583_v43  ;;  %4331 = vmatprep.mubr.msk.f32.mxu0 %vm154_vm1, %v3594_v44  ;;  %v3948_v43 = vld [vmem:[%s5179_s1 + $0x22] ss:$0 sm:$0xff] }
0x12b7   :  { %v3595_v46 = vadd.f32 %v3928_v40, %v3589_v49  ;;  %v3947_v40 = vld [vmem:[%s5179_s1 + $0x21] ss:$0 sm:$0xff] }
0x12b9   :  { %4332 = vmatmul.mubr.msk.f32.vlgmr.msra.gmra.mxu0 %vm154_vm1, %v3595_v46 }
0x1379   :  { %v4333_v57 = vpop.f32.mrf.mxu0 }
0x137a   :  { %v3683_v60 = vadd.f32 %v4333_v57, %v3933_v3 }
0x137b   :  { %v3677_v4 = vpop.f32.mrf.mxu0 }
0x137c   :  { %v3689_v5 = vmul.f32 0.044715, %v3683_v60  ;;  %v3678_v6 = vadd.f32 %v3933_v3, %v3677_v4  ;;  %v3687_v56 = vmul.f32 0.5, %v3683_v60 }
0x137e   :  { %v3691_v7 = vmul.f32 %v3689_v5, %v3683_v60  ;;  %v3688_v8 = vmul.f32 0.044715, %v3678_v6  ;;  %v3686_v53 = vmul.f32 0.5, %v3678_v6 }
0x1380   :  { %v3693_v9 = vmul.f32 %v3691_v7, %v3683_v60  ;;  %v3690_v10 = vmul.f32 %v3688_v8, %v3678_v6 }
0x1382   :  { %v3695_v11 = vadd.f32 %v3693_v9, %v3683_v60  ;;  %v3692_v12 = vmul.f32 %v3690_v10, %v3678_v6 }
0x1384   :  { %v3697_v13 = vmul.f32 0.7978846, %v3695_v11  ;;  %v3694_v14 = vadd.f32 %v3692_v12, %v3678_v6 }
0x1386   :  { %4449 = vtanh.f32 %v3697_v13  ;;  %v3696_v47 = vmul.f32 0.7978846, %v3694_v14 }
0x1388   :  { %4451 = vtanh.f32 %v3696_v47 }
0x1393   :  { %v4450_v45 = vpop.eup %4449 }
0x1394   :  { %v3701_v15 = vadd.f32 1.0, %v4450_v45 }
0x1395   :  { %v4452_v51 = vpop.eup %4451 }
0x1396   :  { %v3700_v55 = vadd.f32 1.0, %v4452_v51  ;;  %v3703_v58 = vmul.f32 %v3701_v15, %v3687_v56 }
0x1398   :  { %v3702_v54 = vmul.f32 %v3700_v55, %v3686_v53 }
0x139a   :  { %4350 = vmatprep.mubr.msk.f32.mxu1 %vm1898_vm10, %v3702_v54 }
0x139b   :  { %4351 = vmatmul.mubr.msk.f32.vlgmr.msra.gmra.mxu1 %vm1898_vm10, %v3703_v58 }
0x145b   :  { %v4352_v17 = vpop.f32.mrf.mxu1 }
0x145c   :  { %v3795_v50 = vadd.f32 %v4352_v17, %v3944_v16 }
0x145d   :  { %v3789_v61 = vpop.f32.mrf.mxu1 }
0x145e   :  { %v3799_v18 = vadd.f32 %v3795_v50, %v3595_v46  ;;  %v3790_v19 = vadd.f32 %v3944_v16, %v3789_v61 }
0x1460   :  { %v3798_v20 = vadd.f32 %v3790_v19, %v3594_v44  ;;  %v3803_v21 = vsel %vm154_vm1, %v3799_v18, 0.0 }
0x1461   :  { %3804 = vadd.xlane.f32.xlu1 %v3803_v21 }
0x1462   :  { %v3800_v22 = vsel %vm154_vm1, %v3798_v20, 0.0 }
0x1463   :  { %3801 = vadd.xlane.f32.xlu0 %v3800_v22 }
0x14ea   :  { %v3805_v23 = vpop.xlane.xlu1 %3804 }
0x14eb   :  { %v3807_v24 = vmul.f32 0.03125, %v3805_v23 }
0x14ec   :  { %v3802_v25 = vpop.xlane.xlu0 %3801 }
0x14ed   :  { %v3809_v38 = vsub.f32 %v3799_v18, %v3807_v24  ;;  %v3806_v37 = vmul.f32 0.03125, %v3802_v25 }
0x14ef   :  { %v3808_v26 = vsub.f32 %v3798_v20, %v3806_v37  ;;  %v3811_v32 = vmul.f32 %v3809_v38, %v3809_v38 }
0x14f1   :  { %v3815_v33 = vsel %vm154_vm1, %v3811_v32, 0.0  ;;  %v3810_v27 = vmul.f32 %v3808_v26, %v3808_v26 }
0x14f2   :  { %3816 = vadd.xlane.f32.xlu1 %v3815_v33 }
0x14f3   :  { %v3812_v28 = vsel %vm154_vm1, %v3810_v27, 0.0 }
0x14f4   :  { %3813 = vadd.xlane.f32.xlu0 %v3812_v28 }
0x157b   :  { %v3817_v29 = vpop.xlane.xlu1 %3816 }
0x157c   :  { %v3819_v30 = vmul.f32 0.03125, %v3817_v29 }
0x157d   :  { %v3814_v31 = vpop.xlane.xlu0 %3813 }
0x157e   :  { %v3821_v34 = vadd.f32 1e-12, %v3819_v30  ;;  %v3818_v35 = vmul.f32 0.03125, %v3814_v31 }
0x1580   :  { %4453 = vrsqrt.f32 %v3821_v34  ;;  %v3820_v36 = vadd.f32 1e-12, %v3818_v35 }
0x1582   :  { %4455 = vrsqrt.f32 %v3820_v36 }
0x158d   :  { %v4454_v39 = vpop.eup %4453 }
0x158e   :  { %v3825_v41 = vmul.f32 %v4454_v39, %v3809_v38 }
0x158f   :  { %v4456_v42 = vpop.eup %4455 }
0x1590   :  { %v3831_v44 = vmul.f32 %v3947_v40, %v3825_v41  ;;  %v3824_v49 = vmul.f32 %v4456_v42, %v3808_v26 }
0x1592   :  { %v3837_v46 = vadd.f32 %v3948_v43, %v3831_v44  ;;  %v3830_v48 = vmul.f32 %v3947_v40, %v3824_v49 }
0x1594   :  { %3839 = vst.msk [vmem:[%s5184_s7 + $0x8] sm:$0xff] %vm154_vm1, %v3837_v46  ;;  %v3836_v52 = vadd.f32 %v3948_v43, %v3830_v48 }
0x1596   :  { %3838 = vst.msk [vmem:[%s5184_s7] sm:$0xff] %vm154_vm1, %v3836_v52 }

</bundles_post_ra>
